<compile_context>
chip_gen: v7x
topology: tpu7x:2x2x1
jax: 0.10.0
libtpu: 0.0.40
codegen_flags: <defaults>
</compile_context>

<pallas_src>
import jax
import jax.numpy as jnp
from jax.experimental import pallas as pl
from jax.experimental.pallas import tpu as pltpu

IMGSIZE = 256  # output width of the LazyLinear, as in the PyTorch module

# Tile caps: sized for v7x (64 MiB VMEM / 2x256^2 MXU); also 128-aligned for
# v5e/v6e.  With bf16 operands, double buffering and the f32 accumulator this
# stays well under the 32 MiB scoped-VMEM default on every generation.
_TM_MAX, _TN_MAX, _TK_MAX = 256, 256, 512
_VMEM_LIMIT = 32 * 1024 * 1024


# ------------------------------ small helpers ------------------------------ #

def _round_up(v, m):
    return (v + m - 1) // m * m


def _choose_tile(dim, align, max_tile):
    """Pick (tile, padded_dim): tile is a multiple of `align` (capped at
    max_tile unless the align-rounded dim is smaller), chosen to minimize
    zero-padding; ties prefer the larger tile (fewer grid steps)."""
    dim_a = _round_up(dim, align)
    if dim_a <= max_tile:
        return dim_a, dim_a
    best_t, best_pad = align, _round_up(dim_a, align)
    for t in range(2 * align, max_tile + 1, align):
        pad = _round_up(dim_a, t)
        if pad < best_pad or (pad == best_pad and t > best_t):
            best_t, best_pad = t, pad
    return best_t, best_pad


def _pad2d(a, rows, cols):
    pr, pc = rows - a.shape[0], cols - a.shape[1]
    if pr == 0 and pc == 0:
        return a
    return jnp.pad(a, ((0, pr), (0, pc)))


# ----------------------------- Pallas kernels ------------------------------ #

def _conv_block_kernel(x_ref, w_ref, b_ref, scale_ref, shift_ref, o_ref, acc_ref):
    """One (tm, tn) output tile of fused Conv(GEMM)+bias+ReLU+eval-BatchNorm.
    K is the reduction grid axis (last); accumulate in f32 scratch."""
    k = pl.program_id(2)

    @pl.when(k == 0)
    def _init():
        acc_ref[...] = jnp.zeros_like(acc_ref)

    acc_ref[...] += jnp.dot(x_ref[...], w_ref[...],
                            preferred_element_type=jnp.float32)

    @pl.when(k == pl.num_programs(2) - 1)
    def _epilogue():
        y = jnp.maximum(acc_ref[...] + b_ref[...], 0.0)       # conv bias + ReLU
        o_ref[...] = y * scale_ref[...] + shift_ref[...]      # folded BatchNorm2d


def _linear_kernel(x_ref, w_ref, b_ref, o_ref, acc_ref):
    """One (tm, tn) output tile of the FC layer: y = x @ W + b."""
    k = pl.program_id(2)

    @pl.when(k == 0)
    def _init():
        acc_ref[...] = jnp.zeros_like(acc_ref)

    acc_ref[...] += jnp.dot(x_ref[...], w_ref[...],
                            preferred_element_type=jnp.float32)

    @pl.when(k == pl.num_programs(2) - 1)
    def _epilogue():
        o_ref[...] = acc_ref[...] + b_ref[...]


def _pearson_kernel(a_ref, b_ref, o_ref):
    """Per-row Pearson correlation over the feature axis (last dim)."""
    a = a_ref[...]
    b = b_ref[...]
    am = jnp.mean(a, axis=-1, keepdims=True)
    bm = jnp.mean(b, axis=-1, keepdims=True)
    ac = a - am
    bc = b - bm
    cov = jnp.sum(ac * bc, axis=-1, keepdims=True)
    va = jnp.sum(ac * ac, axis=-1, keepdims=True)
    vb = jnp.sum(bc * bc, axis=-1, keepdims=True)
    corr = cov * jax.lax.rsqrt(va * vb + 1e-12)   # eps: zero-variance row -> 0, not NaN
    # Lane-dense store: broadcast across the 128-lane axis instead of a
    # lane-width-1 masked store; the wrapper reads back column 0.
    o_ref[...] = jnp.broadcast_to(corr, o_ref.shape)


_VMEM_SPEC = pl.BlockSpec(memory_space=pltpu.MemorySpace.VMEM)


# --------------------------- tiled GEMM wrapper ----------------------------- #

def _gemm(kernel, x, w, aux):
    """Tiled GEMM y = epilogue(x @ w, *aux); aux are per-output-channel (1, N) rows."""
    m, k = x.shape
    _, n = w.shape
    tm, mp = _choose_tile(m, 16, _TM_MAX)      # bf16 sublane pack = 16
    tn, np_ = _choose_tile(n, 128, _TN_MAX)    # lane width = 128
    # K is x's lane dim / w's sublane dim: pad a tiny K (first conv: 3*3*1 = 9)
    # only up to the bf16 sublane pack instead of all the way to 128.
    k_align = 16 if k <= 128 else 128
    tk, kp = _choose_tile(k, k_align, _TK_MAX)

    xp = _pad2d(x.astype(jnp.bfloat16), mp, kp)
    wp = _pad2d(w.astype(jnp.bfloat16), kp, np_)
    auxp = [_pad2d(a.astype(jnp.float32), 1, np_) for a in aux]

    grid = (mp // tm, np_ // tn, kp // tk)
    aux_spec = pl.BlockSpec((1, tn), lambda i, j, kk: (0, j))
    cost = pl.CostEstimate(
        flops=2 * mp * np_ * kp,
        transcendentals=0,
        bytes_accessed=2 * (mp * kp + kp * np_) + 4 * mp * np_,
    )
    out = pl.pallas_call(
        kernel,
        out_shape=jax.ShapeDtypeStruct((mp, np_), jnp.float32),
        grid_spec=pltpu.PrefetchScalarGridSpec(
            num_scalar_prefetch=0,
            grid=grid,
            in_specs=[pl.BlockSpec((tm, tk), lambda i, j, kk: (i, kk)),
                      pl.BlockSpec((tk, tn), lambda i, j, kk: (kk, j))]
                     + [aux_spec] * len(aux),
            out_specs=pl.BlockSpec((tm, tn), lambda i, j, kk: (i, j)),
            scratch_shapes=[pltpu.VMEM((tm, tn), jnp.float32)],
        ),
        compiler_params=pltpu.CompilerParams(
            dimension_semantics=("parallel", "parallel", "arbitrary"),
            vmem_limit_bytes=_VMEM_LIMIT,
        ),
        cost_estimate=cost,
    )(xp, wp, *auxp)
    return out[:m, :n]


def _conv_block_matmul(x2d, w2d, bias, scale, shift):
    return _gemm(_conv_block_kernel, x2d, w2d, [bias, scale, shift])


def _linear(x, w, b):
    return _gemm(_linear_kernel, x, w, [b])


def _pearson(a, b):
    m = a.shape[0]
    out = pl.pallas_call(
        _pearson_kernel,
        out_shape=jax.ShapeDtypeStruct((m, 128), jnp.float32),
        in_specs=[_VMEM_SPEC, _VMEM_SPEC],
        out_specs=_VMEM_SPEC,
    )(a.astype(jnp.float32), b.astype(jnp.float32))
    return out[:, 0]


# ------------------------------- glue (JAX) -------------------------------- #

def _im2col(x_nhwc, kh, kw, stride, padding):
    """x: (N, H, W, C) -> (N*Hout*Wout, KH*KW*C), plus (Hout, Wout)."""
    # TODO(synk): replace with an implicit-GEMM conv kernel (loop over the KH*KW
    # taps inside the Pallas kernel with strided loads) so the expanded patch
    # matrix is never materialized in HBM at large image sizes.
    x = jnp.pad(x_nhwc, ((0, 0), (padding, padding), (padding, padding), (0, 0)))
    n, hp, wp, c = x.shape
    hout = (hp - kh) // stride + 1
    wout = (wp - kw) // stride + 1
    patches = []
    for i in range(kh):
        for j in range(kw):
            patches.append(
                x[:, i:i + stride * hout:stride, j:j + stride * wout:stride, :])
    p = jnp.stack(patches, axis=3)                 # (N, Hout, Wout, KH*KW, C)
    p = p.reshape(n * hout * wout, kh * kw * c)
    return p, hout, wout


def init_params(key, blocks, kernel_size, in_h, in_w, stride=2, padding=1):
    """Deterministic synthetic parameters matching the module's shapes."""
    params = {"conv_blocks": []}
    # Execution order of basecnn blocks: i = blocks-1, blocks-2, ..., 0
    cin = 1
    for i in reversed(range(blocks)):
        cout = int(256 / 2 ** i)
        key, kw_key, kb_key = jax.random.split(key, 3)
        # weight stored PyTorch-style (Cout, Cin, KH, KW), then rearranged for GEMM
        w_pt = 0.1 * jax.random.normal(
            kw_key, (cout, cin, kernel_size, kernel_size), jnp.float32)
        b = 0.1 * jax.random.normal(kb_key, (cout,), jnp.float32)
        # BatchNorm2d default init + fresh running stats (eval mode)
        gamma = jnp.ones((cout,), jnp.float32)
        beta = jnp.zeros((cout,), jnp.float32)
        run_mean = jnp.zeros((cout,), jnp.float32)
        run_var = jnp.ones((cout,), jnp.float32)
        eps = 1e-5
        scale = gamma / jnp.sqrt(run_var + eps)
        shift = beta - run_mean * scale
        w2d = jnp.transpose(w_pt, (2, 3, 1, 0)).reshape(
            kernel_size * kernel_size * cin, cout)
        params["conv_blocks"].append(dict(
            w2d=w2d, b=b.reshape(1, cout),
            scale=scale.reshape(1, cout), shift=shift.reshape(1, cout),
            cout=cout))
        cin = cout
    # flatten size for the LazyLinear
    h, w = in_h, in_w
    for _ in range(blocks):
        h = (h + 2 * padding - kernel_size) // stride + 1
        w = (w + 2 * padding - kernel_size) // stride + 1
    flat = cin * h * w
    key, fw_key, fb_key = jax.random.split(key, 3)
    fc_w_pt = 0.02 * jax.random.normal(fw_key, (flat, IMGSIZE), jnp.float32)
    # Fold the NHWC->NCHW relayout into the constant weight: permute rows once
    # so NHWC-flattened features hit the same weights as torch's
    # Flatten-on-NCHW followed by LazyLinear (no runtime transpose).
    perm = jnp.arange(flat).reshape(cin, h, w).transpose(1, 2, 0).reshape(-1)
    params["fc_w"] = fc_w_pt[perm]
    params["fc_b"] = 0.02 * jax.random.normal(fb_key, (1, IMGSIZE), jnp.float32)
    params["conv_cfg"] = dict(kernel_size=kernel_size, stride=stride,
                              padding=padding)
    return params


def forward_once(params, x_nchw):
    cfg = params["conv_cfg"]
    x = jnp.transpose(x_nchw, (0, 2, 3, 1)).astype(jnp.float32)   # NCHW -> NHWC
    n = x.shape[0]
    for blk in params["conv_blocks"]:
        x2d, hout, wout = _im2col(x, cfg["kernel_size"], cfg["kernel_size"],
                                  cfg["stride"], cfg["padding"])
        y2d = _conv_block_matmul(x2d, blk["w2d"], blk["b"],
                                 blk["scale"], blk["shift"])
        x = y2d.reshape(n, hout, wout, blk["cout"])
        # Dropout2d(0.5): identity in eval mode.
    # NHWC flatten; the NCHW row permutation is baked into fc_w at init.
    flat = x.reshape(n, -1)
    return _linear(flat, params["fc_w"], params["fc_b"])


def hazelnet_forward(params, template_nchw, img_nchw):
    # Run template and img through the shared basecnn+FC as ONE batch: halves
    # the pallas_call launches and doubles M in every matmul.
    b = template_nchw.shape[0]
    both = jnp.concatenate([template_nchw, img_nchw], axis=0)
    feats = forward_once(params, both)                 # (2B, IMGSIZE)
    # distance_layer: per-sample Pearson correlation across the 256 features
    return _pearson(feats[:b], feats[b:])


# ---------------------------------- main ----------------------------------- #

if __name__ == "__main__":
    # HazelNet(blocks=2, kernel_size=3, stride=2, padding=1, seed=0)
    BLOCKS, KSIZE = 2, 3
    B, H, W = 2, 16, 16          # small grayscale images, NCHW like PyTorch

    key = jax.random.PRNGKey(0)
    key, kt, ki = jax.random.split(key, 3)
    template = jax.random.normal(kt, (B, 1, H, W), jnp.float32)
    img = jax.random.normal(ki, (B, 1, H, W), jnp.float32)

    params = init_params(key, BLOCKS, KSIZE, H, W)

    fwd = jax.jit(lambda t, i: hazelnet_forward(params, t, i))
    sim = jax.block_until_ready(fwd(template, img))
    assert sim.shape == (B,)
    assert bool(jnp.all(jnp.isfinite(sim)))
    print("KERNEL_OK")
</pallas_src>

<mosaic_0001>
module attributes {stable_mosaic.version = 11 : i64} {
  func.func @_conv_block_kernel(%arg0: i32, %arg1: i32, %arg2: i32, %arg3: memref<256x16xbf16, #tpu.memory_space<vmem>>, %arg4: memref<16x128xbf16, #tpu.memory_space<vmem>>, %arg5: memref<1x128xf32, #tpu.memory_space<vmem>>, %arg6: memref<1x128xf32, #tpu.memory_space<vmem>>, %arg7: memref<1x128xf32, #tpu.memory_space<vmem>>, %arg8: memref<256x128xf32, #tpu.memory_space<vmem>>, %arg9: memref<256x128xf32, #tpu.memory_space<vmem>>) attributes {dimension_semantics = [#tpu.dimension_semantics<parallel>, #tpu.dimension_semantics<parallel>, #tpu.dimension_semantics<arbitrary>], iteration_bounds = array<i64: 1, 1, 1>, scalar_prefetch = 0 : i64, scratch_operands = 1 : i64, tpu.core_type = #tpu.core_type<tc>, window_params = [{transform_indices = @transform_0, window_bounds = array<i64: 256, 16>}, {transform_indices = @transform_1, window_bounds = array<i64: 16, 128>}, {transform_indices = @transform_2, window_bounds = array<i64: 1, 128>}, {transform_indices = @transform_3, window_bounds = array<i64: 1, 128>}, {transform_indices = @transform_4, window_bounds = array<i64: 1, 128>}, {transform_indices = @transform_5, window_bounds = array<i64: 256, 128>}]} {
    %c0_i32 = arith.constant 0 : i32
    %0 = arith.cmpi eq, %arg2, %c0_i32 : i32
    %1 = arith.extui %0 : i1 to i32
    %c0_i32_0 = arith.constant 0 : i32
    %2 = arith.cmpi ne, %1, %c0_i32_0 : i32
    scf.if %2 {
      %cst_10 = arith.constant 0.000000e+00 : f32
      %12 = vector.broadcast %cst_10 : f32 to vector<256x128xf32>
      %c0_11 = arith.constant 0 : index
      %c0_12 = arith.constant 0 : index
      %13 = vector.load %arg9[%c0_11, %c0_12] : memref<256x128xf32, #tpu.memory_space<vmem>>, vector<256x128xf32>
      tpu.vector_store %arg9[%c0_11, %c0_12], %12 {strides = array<i32>} : memref<256x128xf32, #tpu.memory_space<vmem>>, vector<256x128xf32>,
    } else {
    }
    %c0 = arith.constant 0 : index
    %c0_1 = arith.constant 0 : index
    %3 = vector.load %arg9[%c0, %c0_1] : memref<256x128xf32, #tpu.memory_space<vmem>>, vector<256x128xf32>
    %c0_2 = arith.constant 0 : index
    %c0_3 = arith.constant 0 : index
    %4 = vector.load %arg3[%c0_2, %c0_3] : memref<256x16xbf16, #tpu.memory_space<vmem>>, vector<256x16xbf16>
    %c0_4 = arith.constant 0 : index
    %c0_5 = arith.constant 0 : index
    %5 = vector.load %arg4[%c0_4, %c0_5] : memref<16x128xbf16, #tpu.memory_space<vmem>>, vector<16x128xbf16>
    %cst = arith.constant dense<0.000000e+00> : vector<256x128xf32>
    %6 = tpu.matmul %4, %5, %cst {dimension_numbers = #tpu.dot_dimension_numbers<[1], [0], [0], [1], [0, 0, 1, 1], [], []>} : vector<256x16xbf16>, vector<16x128xbf16>, vector<256x128xf32> -> vector<256x128xf32>
    %7 = arith.addf %3, %6 : vector<256x128xf32>
    %c0_6 = arith.constant 0 : index
    %c0_7 = arith.constant 0 : index
    %8 = vector.load %arg9[%c0_6, %c0_7] : memref<256x128xf32, #tpu.memory_space<vmem>>, vector<256x128xf32>
    tpu.vector_store %arg9[%c0_6, %c0_7], %7 {strides = array<i32>} : memref<256x128xf32, #tpu.memory_space<vmem>>, vector<256x128xf32>,
    %c0_i32_8 = arith.constant 0 : i32
    %9 = arith.cmpi eq, %arg2, %c0_i32_8 : i32
    %10 = arith.extui %9 : i1 to i32
    %c0_i32_9 = arith.constant 0 : i32
    %11 = arith.cmpi ne, %10, %c0_i32_9 : i32
    scf.if %11 {
      %c0_10 = arith.constant 0 : index
      %c0_11 = arith.constant 0 : index
      %12 = vector.load %arg9[%c0_10, %c0_11] : memref<256x128xf32, #tpu.memory_space<vmem>>, vector<256x128xf32>
      %c0_12 = arith.constant 0 : index
      %c0_13 = arith.constant 0 : index
      %13 = vector.load %arg5[%c0_12, %c0_13] : memref<1x128xf32, #tpu.memory_space<vmem>>, vector<1x128xf32>
      %14 = vector.broadcast %13 : vector<1x128xf32> to vector<256x128xf32>
      %15 = arith.addf %12, %14 : vector<256x128xf32>
      %cst_14 = arith.constant 0.000000e+00 : f32
      %16 = vector.broadcast %cst_14 : f32 to vector<256x128xf32>
      %17 = arith.maximumf %15, %16 : vector<256x128xf32>
      %c0_15 = arith.constant 0 : index
      %c0_16 = arith.constant 0 : index
      %18 = vector.load %arg6[%c0_15, %c0_16] : memref<1x128xf32, #tpu.memory_space<vmem>>, vector<1x128xf32>
      %19 = vector.broadcast %18 : vector<1x128xf32> to vector<256x128xf32>
      %20 = arith.mulf %17, %19 : vector<256x128xf32>
      %c0_17 = arith.constant 0 : index
      %c0_18 = arith.constant 0 : index
      %21 = vector.load %arg7[%c0_17, %c0_18] : memref<1x128xf32, #tpu.memory_space<vmem>>, vector<1x128xf32>
      %22 = vector.broadcast %21 : vector<1x128xf32> to vector<256x128xf32>
      %23 = arith.addf %20, %22 : vector<256x128xf32>
      %c0_19 = arith.constant 0 : index
      %c0_20 = arith.constant 0 : index
      %24 = vector.load %arg8[%c0_19, %c0_20] : memref<256x128xf32, #tpu.memory_space<vmem>>, vector<256x128xf32>
      tpu.vector_store %arg8[%c0_19, %c0_20], %23 {strides = array<i32>} : memref<256x128xf32, #tpu.memory_space<vmem>>, vector<256x128xf32>,
    } else {
    }
    return
  }
  func.func @transform_0(%arg0: i32, %arg1: i32, %arg2: i32) -> (i32, i32) {
    %c0_i32 = arith.constant 0 : i32
    return %arg0, %arg2 : i32, i32
  }
  func.func @transform_1(%arg0: i32, %arg1: i32, %arg2: i32) -> (i32, i32) {
    %c0_i32 = arith.constant 0 : i32
    return %arg2, %arg1 : i32, i32
  }
  func.func @transform_2(%arg0: i32, %arg1: i32, %arg2: i32) -> (i32, i32) {
    %c0_i32 = arith.constant 0 : i32
    %c0_i32_0 = arith.constant 0 : i32
    return %c0_i32, %arg1 : i32, i32
  }
  func.func @transform_3(%arg0: i32, %arg1: i32, %arg2: i32) -> (i32, i32) {
    %c0_i32 = arith.constant 0 : i32
    %c0_i32_0 = arith.constant 0 : i32
    return %c0_i32, %arg1 : i32, i32
  }
  func.func @transform_4(%arg0: i32, %arg1: i32, %arg2: i32) -> (i32, i32) {
    %c0_i32 = arith.constant 0 : i32
    %c0_i32_0 = arith.constant 0 : i32
    return %c0_i32, %arg1 : i32, i32
  }
  func.func @transform_5(%arg0: i32, %arg1: i32, %arg2: i32) -> (i32, i32) {
    %c0_i32 = arith.constant 0 : i32
    return %arg0, %arg1 : i32, i32
  }
}

module attributes {stable_mosaic.version = 11 : i64} {
  func.func @_conv_block_kernel(%arg0: i32, %arg1: i32, %arg2: i32, %arg3: memref<64x384xbf16, #tpu.memory_space<vmem>>, %arg4: memref<384x256xbf16, #tpu.memory_space<vmem>>, %arg5: memref<1x256xf32, #tpu.memory_space<vmem>>, %arg6: memref<1x256xf32, #tpu.memory_space<vmem>>, %arg7: memref<1x256xf32, #tpu.memory_space<vmem>>, %arg8: memref<64x256xf32, #tpu.memory_space<vmem>>, %arg9: memref<64x256xf32, #tpu.memory_space<vmem>>) attributes {dimension_semantics = [#tpu.dimension_semantics<parallel>, #tpu.dimension_semantics<parallel>, #tpu.dimension_semantics<arbitrary>], iteration_bounds = array<i64: 1, 1, 3>, scalar_prefetch = 0 : i64, scratch_operands = 1 : i64, tpu.core_type = #tpu.core_type<tc>, window_params = [{transform_indices = @transform_0, window_bounds = array<i64: 64, 384>}, {transform_indices = @transform_1, window_bounds = array<i64: 384, 256>}, {transform_indices = @transform_2, window_bounds = array<i64: 1, 256>}, {transform_indices = @transform_3, window_bounds = array<i64: 1, 256>}, {transform_indices = @transform_4, window_bounds = array<i64: 1, 256>}, {transform_indices = @transform_5, window_bounds = array<i64: 64, 256>}]} {
    %c0_i32 = arith.constant 0 : i32
    %0 = arith.cmpi eq, %arg2, %c0_i32 : i32
    %1 = arith.extui %0 : i1 to i32
    %c0_i32_0 = arith.constant 0 : i32
    %2 = arith.cmpi ne, %1, %c0_i32_0 : i32
    scf.if %2 {
      %cst_9 = arith.constant 0.000000e+00 : f32
      %12 = vector.broadcast %cst_9 : f32 to vector<64x256xf32>
      %c0_10 = arith.constant 0 : index
      %c0_11 = arith.constant 0 : index
      %13 = vector.load %arg9[%c0_10, %c0_11] : memref<64x256xf32, #tpu.memory_space<vmem>>, vector<64x256xf32>
      tpu.vector_store %arg9[%c0_10, %c0_11], %12 {strides = array<i32>} : memref<64x256xf32, #tpu.memory_space<vmem>>, vector<64x256xf32>,
    } else {
    }
    %c0 = arith.constant 0 : index
    %c0_1 = arith.constant 0 : index
    %3 = vector.load %arg9[%c0, %c0_1] : memref<64x256xf32, #tpu.memory_space<vmem>>, vector<64x256xf32>
    %c0_2 = arith.constant 0 : index
    %c0_3 = arith.constant 0 : index
    %4 = vector.load %arg3[%c0_2, %c0_3] : memref<64x384xbf16, #tpu.memory_space<vmem>>, vector<64x384xbf16>
    %c0_4 = arith.constant 0 : index
    %c0_5 = arith.constant 0 : index
    %5 = vector.load %arg4[%c0_4, %c0_5] : memref<384x256xbf16, #tpu.memory_space<vmem>>, vector<384x256xbf16>
    %cst = arith.constant dense<0.000000e+00> : vector<64x256xf32>
    %6 = tpu.matmul %4, %5, %cst {dimension_numbers = #tpu.dot_dimension_numbers<[1], [0], [0], [1], [0, 0, 1, 1], [], []>} : vector<64x384xbf16>, vector<384x256xbf16>, vector<64x256xf32> -> vector<64x256xf32>
    %7 = arith.addf %3, %6 : vector<64x256xf32>
    %c0_6 = arith.constant 0 : index
    %c0_7 = arith.constant 0 : index
    %8 = vector.load %arg9[%c0_6, %c0_7] : memref<64x256xf32, #tpu.memory_space<vmem>>, vector<64x256xf32>
    tpu.vector_store %arg9[%c0_6, %c0_7], %7 {strides = array<i32>} : memref<64x256xf32, #tpu.memory_space<vmem>>, vector<64x256xf32>,
    %c2_i32 = arith.constant 2 : i32
    %9 = arith.cmpi eq, %arg2, %c2_i32 : i32
    %10 = arith.extui %9 : i1 to i32
    %c0_i32_8 = arith.constant 0 : i32
    %11 = arith.cmpi ne, %10, %c0_i32_8 : i32
    scf.if %11 {
      %c0_9 = arith.constant 0 : index
      %c0_10 = arith.constant 0 : index
      %12 = vector.load %arg9[%c0_9, %c0_10] : memref<64x256xf32, #tpu.memory_space<vmem>>, vector<64x256xf32>
      %c0_11 = arith.constant 0 : index
      %c0_12 = arith.constant 0 : index
      %13 = vector.load %arg5[%c0_11, %c0_12] : memref<1x256xf32, #tpu.memory_space<vmem>>, vector<1x256xf32>
      %14 = vector.broadcast %13 : vector<1x256xf32> to vector<64x256xf32>
      %15 = arith.addf %12, %14 : vector<64x256xf32>
      %cst_13 = arith.constant 0.000000e+00 : f32
      %16 = vector.broadcast %cst_13 : f32 to vector<64x256xf32>
      %17 = arith.maximumf %15, %16 : vector<64x256xf32>
      %c0_14 = arith.constant 0 : index
      %c0_15 = arith.constant 0 : index
      %18 = vector.load %arg6[%c0_14, %c0_15] : memref<1x256xf32, #tpu.memory_space<vmem>>, vector<1x256xf32>
      %19 = vector.broadcast %18 : vector<1x256xf32> to vector<64x256xf32>
      %20 = arith.mulf %17, %19 : vector<64x256xf32>
      %c0_16 = arith.constant 0 : index
      %c0_17 = arith.constant 0 : index
      %21 = vector.load %arg7[%c0_16, %c0_17] : memref<1x256xf32, #tpu.memory_space<vmem>>, vector<1x256xf32>
      %22 = vector.broadcast %21 : vector<1x256xf32> to vector<64x256xf32>
      %23 = arith.addf %20, %22 : vector<64x256xf32>
      %c0_18 = arith.constant 0 : index
      %c0_19 = arith.constant 0 : index
      %24 = vector.load %arg8[%c0_18, %c0_19] : memref<64x256xf32, #tpu.memory_space<vmem>>, vector<64x256xf32>
      tpu.vector_store %arg8[%c0_18, %c0_19], %23 {strides = array<i32>} : memref<64x256xf32, #tpu.memory_space<vmem>>, vector<64x256xf32>,
    } else {
    }
    return
  }
  func.func @transform_0(%arg0: i32, %arg1: i32, %arg2: i32) -> (i32, i32) {
    %c0_i32 = arith.constant 0 : i32
    return %arg0, %arg2 : i32, i32
  }
  func.func @transform_1(%arg0: i32, %arg1: i32, %arg2: i32) -> (i32, i32) {
    %c0_i32 = arith.constant 0 : i32
    return %arg2, %arg1 : i32, i32
  }
  func.func @transform_2(%arg0: i32, %arg1: i32, %arg2: i32) -> (i32, i32) {
    %c0_i32 = arith.constant 0 : i32
    %c0_i32_0 = arith.constant 0 : i32
    return %c0_i32, %arg1 : i32, i32
  }
  func.func @transform_3(%arg0: i32, %arg1: i32, %arg2: i32) -> (i32, i32) {
    %c0_i32 = arith.constant 0 : i32
    %c0_i32_0 = arith.constant 0 : i32
    return %c0_i32, %arg1 : i32, i32
  }
  func.func @transform_4(%arg0: i32, %arg1: i32, %arg2: i32) -> (i32, i32) {
    %c0_i32 = arith.constant 0 : i32
    %c0_i32_0 = arith.constant 0 : i32
    return %c0_i32, %arg1 : i32, i32
  }
  func.func @transform_5(%arg0: i32, %arg1: i32, %arg2: i32) -> (i32, i32) {
    %c0_i32 = arith.constant 0 : i32
    return %arg0, %arg1 : i32, i32
  }
}

module attributes {stable_mosaic.version = 11 : i64} {
  func.func @_linear_kernel(%arg0: i32, %arg1: i32, %arg2: i32, %arg3: memref<16x512xbf16, #tpu.memory_space<vmem>>, %arg4: memref<512x256xbf16, #tpu.memory_space<vmem>>, %arg5: memref<1x256xf32, #tpu.memory_space<vmem>>, %arg6: memref<16x256xf32, #tpu.memory_space<vmem>>, %arg7: memref<16x256xf32, #tpu.memory_space<vmem>>) attributes {dimension_semantics = [#tpu.dimension_semantics<parallel>, #tpu.dimension_semantics<parallel>, #tpu.dimension_semantics<arbitrary>], iteration_bounds = array<i64: 1, 1, 8>, scalar_prefetch = 0 : i64, scratch_operands = 1 : i64, tpu.core_type = #tpu.core_type<tc>, window_params = [{transform_indices = @transform_0, window_bounds = array<i64: 16, 512>}, {transform_indices = @transform_1, window_bounds = array<i64: 512, 256>}, {transform_indices = @transform_2, window_bounds = array<i64: 1, 256>}, {transform_indices = @transform_3, window_bounds = array<i64: 16, 256>}]} {
    %c0_i32 = arith.constant 0 : i32
    %0 = arith.cmpi eq, %arg2, %c0_i32 : i32
    %1 = arith.extui %0 : i1 to i32
    %c0_i32_0 = arith.constant 0 : i32
    %2 = arith.cmpi ne, %1, %c0_i32_0 : i32
    scf.if %2 {
      %cst_9 = arith.constant 0.000000e+00 : f32
      %12 = vector.broadcast %cst_9 : f32 to vector<16x256xf32>
      %c0_10 = arith.constant 0 : index
      %c0_11 = arith.constant 0 : index
      %13 = vector.load %arg7[%c0_10, %c0_11] : memref<16x256xf32, #tpu.memory_space<vmem>>, vector<16x256xf32>
      tpu.vector_store %arg7[%c0_10, %c0_11], %12 {strides = array<i32>} : memref<16x256xf32, #tpu.memory_space<vmem>>, vector<16x256xf32>,
    } else {
    }
    %c0 = arith.constant 0 : index
    %c0_1 = arith.constant 0 : index
    %3 = vector.load %arg7[%c0, %c0_1] : memref<16x256xf32, #tpu.memory_space<vmem>>, vector<16x256xf32>
    %c0_2 = arith.constant 0 : index
    %c0_3 = arith.constant 0 : index
    %4 = vector.load %arg3[%c0_2, %c0_3] : memref<16x512xbf16, #tpu.memory_space<vmem>>, vector<16x512xbf16>
    %c0_4 = arith.constant 0 : index
    %c0_5 = arith.constant 0 : index
    %5 = vector.load %arg4[%c0_4, %c0_5] : memref<512x256xbf16, #tpu.memory_space<vmem>>, vector<512x256xbf16>
    %cst = arith.constant dense<0.000000e+00> : vector<16x256xf32>
    %6 = tpu.matmul %4, %5, %cst {dimension_numbers = #tpu.dot_dimension_numbers<[1], [0], [0], [1], [0, 0, 1, 1], [], []>} : vector<16x512xbf16>, vector<512x256xbf16>, vector<16x256xf32> -> vector<16x256xf32>
    %7 = arith.addf %3, %6 : vector<16x256xf32>
    %c0_6 = arith.constant 0 : index
    %c0_7 = arith.constant 0 : index
    %8 = vector.load %arg7[%c0_6, %c0_7] : memref<16x256xf32, #tpu.memory_space<vmem>>, vector<16x256xf32>
    tpu.vector_store %arg7[%c0_6, %c0_7], %7 {strides = array<i32>} : memref<16x256xf32, #tpu.memory_space<vmem>>, vector<16x256xf32>,
    %c7_i32 = arith.constant 7 : i32
    %9 = arith.cmpi eq, %arg2, %c7_i32 : i32
    %10 = arith.extui %9 : i1 to i32
    %c0_i32_8 = arith.constant 0 : i32
    %11 = arith.cmpi ne, %10, %c0_i32_8 : i32
    scf.if %11 {
      %c0_9 = arith.constant 0 : index
      %c0_10 = arith.constant 0 : index
      %12 = vector.load %arg7[%c0_9, %c0_10] : memref<16x256xf32, #tpu.memory_space<vmem>>, vector<16x256xf32>
      %c0_11 = arith.constant 0 : index
      %c0_12 = arith.constant 0 : index
      %13 = vector.load %arg5[%c0_11, %c0_12] : memref<1x256xf32, #tpu.memory_space<vmem>>, vector<1x256xf32>
      %14 = vector.broadcast %13 : vector<1x256xf32> to vector<16x256xf32>
      %15 = arith.addf %12, %14 : vector<16x256xf32>
      %c0_13 = arith.constant 0 : index
      %c0_14 = arith.constant 0 : index
      %16 = vector.load %arg6[%c0_13, %c0_14] : memref<16x256xf32, #tpu.memory_space<vmem>>, vector<16x256xf32>
      tpu.vector_store %arg6[%c0_13, %c0_14], %15 {strides = array<i32>} : memref<16x256xf32, #tpu.memory_space<vmem>>, vector<16x256xf32>,
    } else {
    }
    return
  }
  func.func @transform_0(%arg0: i32, %arg1: i32, %arg2: i32) -> (i32, i32) {
    %c0_i32 = arith.constant 0 : i32
    return %arg0, %arg2 : i32, i32
  }
  func.func @transform_1(%arg0: i32, %arg1: i32, %arg2: i32) -> (i32, i32) {
    %c0_i32 = arith.constant 0 : i32
    return %arg2, %arg1 : i32, i32
  }
  func.func @transform_2(%arg0: i32, %arg1: i32, %arg2: i32) -> (i32, i32) {
    %c0_i32 = arith.constant 0 : i32
    %c0_i32_0 = arith.constant 0 : i32
    return %c0_i32, %arg1 : i32, i32
  }
  func.func @transform_3(%arg0: i32, %arg1: i32, %arg2: i32) -> (i32, i32) {
    %c0_i32 = arith.constant 0 : i32
    return %arg0, %arg1 : i32, i32
  }
}

module attributes {stable_mosaic.version = 11 : i64} {
  func.func @_pearson_kernel(%arg0: memref<2x256xf32, #tpu.memory_space<vmem>>, %arg1: memref<2x256xf32, #tpu.memory_space<vmem>>, %arg2: memref<2x128xf32, #tpu.memory_space<vmem>>) attributes {dimension_semantics = [], scalar_prefetch = 0 : i64, scratch_operands = 0 : i64, tpu.core_type = #tpu.core_type<tc>} {
    %c0 = arith.constant 0 : index
    %c0_0 = arith.constant 0 : index
    %0 = vector.load %arg0[%c0, %c0_0] : memref<2x256xf32, #tpu.memory_space<vmem>>, vector<2x256xf32>
    %c0_1 = arith.constant 0 : index
    %c0_2 = arith.constant 0 : index
    %1 = vector.load %arg1[%c0_1, %c0_2] : memref<2x256xf32, #tpu.memory_space<vmem>>, vector<2x256xf32>
    %cst = arith.constant dense<0.000000e+00> : vector<2xf32>
    %2 = vector.multi_reduction <add>, %0, %cst [1] : vector<2x256xf32> to vector<2xf32>
    %3 = vector.shape_cast %2 : vector<2xf32> to vector<2x1xf32>
    %cst_3 = arith.constant 2.560000e+02 : f32
    %4 = vector.broadcast %cst_3 : f32 to vector<2x1xf32>
    %5 = arith.divf %3, %4 : vector<2x1xf32>
    %cst_4 = arith.constant dense<0.000000e+00> : vector<2xf32>
    %6 = vector.multi_reduction <add>, %1, %cst_4 [1] : vector<2x256xf32> to vector<2xf32>
    %7 = vector.shape_cast %6 : vector<2xf32> to vector<2x1xf32>
    %cst_5 = arith.constant 2.560000e+02 : f32
    %8 = vector.broadcast %cst_5 : f32 to vector<2x1xf32>
    %9 = arith.divf %7, %8 : vector<2x1xf32>
    %10 = vector.broadcast %5 : vector<2x1xf32> to vector<2x256xf32>
    %11 = arith.subf %0, %10 : vector<2x256xf32>
    %12 = vector.broadcast %9 : vector<2x1xf32> to vector<2x256xf32>
    %13 = arith.subf %1, %12 : vector<2x256xf32>
    %14 = arith.mulf %11, %13 : vector<2x256xf32>
    %cst_6 = arith.constant dense<0.000000e+00> : vector<2xf32>
    %15 = vector.multi_reduction <add>, %14, %cst_6 [1] : vector<2x256xf32> to vector<2xf32>
    %16 = vector.shape_cast %15 : vector<2xf32> to vector<2x1xf32>
    %17 = arith.mulf %11, %11 : vector<2x256xf32>
    %cst_7 = arith.constant dense<0.000000e+00> : vector<2xf32>
    %18 = vector.multi_reduction <add>, %17, %cst_7 [1] : vector<2x256xf32> to vector<2xf32>
    %19 = vector.shape_cast %18 : vector<2xf32> to vector<2x1xf32>
    %20 = arith.mulf %13, %13 : vector<2x256xf32>
    %cst_8 = arith.constant dense<0.000000e+00> : vector<2xf32>
    %21 = vector.multi_reduction <add>, %20, %cst_8 [1] : vector<2x256xf32> to vector<2xf32>
    %22 = vector.shape_cast %21 : vector<2xf32> to vector<2x1xf32>
    %23 = arith.mulf %19, %22 : vector<2x1xf32>
    %cst_9 = arith.constant 9.99999996E-13 : f32
    %24 = vector.broadcast %cst_9 : f32 to vector<2x1xf32>
    %25 = arith.addf %23, %24 : vector<2x1xf32>
    %26 = math.rsqrt %25 : vector<2x1xf32>
    %27 = arith.mulf %16, %26 : vector<2x1xf32>
    %28 = vector.shape_cast %27 : vector<2x1xf32> to vector<2x1xf32>
    %29 = vector.broadcast %28 : vector<2x1xf32> to vector<2x128xf32>
    %c0_10 = arith.constant 0 : index
    %c0_11 = arith.constant 0 : index
    %30 = vector.load %arg2[%c0_10, %c0_11] : memref<2x128xf32, #tpu.memory_space<vmem>>, vector<2x128xf32>
    tpu.vector_store %arg2[%c0_10, %c0_11], %29 {strides = array<i32>} : memref<2x128xf32, #tpu.memory_space<vmem>>, vector<2x128xf32>,
    return
  }
}

</mosaic_0001>

<bundles_post_ra>
// kernel: _lambda_.4
= control target key start
LH: loop header
LB: loop body
LE: loop exit
PB: predicated region body
PF: predicated region fallthrough
CT: control target
= control target key end

     0   :  { %10 = vsyncpa [#allocation4], 0  ;;  %s1215_s0 = inlined_call_operand.vmem [shape: bf16[256,16], index: 0, kind: input, shape index: {}]   ;;  %s1216_s1 = inlined_call_operand.hbm [shape: bf16[16,128], index: 1, kind: input, shape index: {}]   ;;  %s1217_s2 = inlined_call_operand.hbm [shape: f32[1,128], index: 2, kind: input, shape index: {}]   ;;  %s1218_s3 = inlined_call_operand.vmem [shape: f32[1,128], index: 3, kind: input, shape index: {}]   ;;  %s1219_s4 = inlined_call_operand.vmem [shape: f32[1,128], index: 4, kind: input, shape index: {}]   ;;  %s1220_s5 = inlined_call_operand.vmem [shape: f32[256,128], index: 5, kind: output, shape index: {}]  }
   0x1   :  { %11 = vsyncpa [#allocation6], 0  ;;  %s889_s18 = smov [#allocation3]   ;;  %s841_s22 = scalar_lea.hbm %s1216_s1, 128 }
   0x2   :  { %s19_s19 = sshll.u32 %s889_s18, 4  ;;  %p842_p0 = scmp.ne.s32.totalorder %s1216_s1, %s841_s22  ;;  %s20_s19 = int_to_ptr.vmem [resolvable:$true] %s19_s19 }
   0x3   :  { %p845_p1 = scmp.lt.u32.totalorder %s841_s22, %s1216_s1 }
   0x5   :  { %p847_p2 = pnand %p845_p1, %p842_p0 }
   0x7   :  { %850 = shalt.err (!%p847_p2)
}
   0x8   :  { %s851_s27 = scalar_lea.vmem %s20_s19, 128  ;;  %p856_p4 = scmp.lt.s32.totalorder %s20_s19, %s20_s19 }
   0x9   :  { %p852_p3 = scmp.ne.s32.totalorder %s20_s19, %s851_s27  ;;  %p857_p5 = scmp.lt.s32.totalorder %s851_s27, %s851_s27 }
   0xb   :  { %p858_p6 = por %p857_p5, %p856_p4 }
   0xd   :  { %p859_p7 = pnand %p858_p6, %p852_p3 }
   0xf   :  { %862 = shalt.err (!%p859_p7)
}
  0x10   :  { %s890_s28 = smov 64   ;;  %s891_s29 = smov 4  }
  0x11   :  { %25 = dma.hbm_to_vmem [thread:$0]  %s1216_s1, 128, %s20_s19, [#allocation4], %s890_s28, %s890_s28, %s891_s29  }
  0x12   :  { %s892_s7 = smov [#allocation5]   ;;  %s863_s11 = scalar_lea.hbm %s1217_s2, 16 }
  0x13   :  { %s32_s8 = sshll.u32 %s892_s7, 4  ;;  %p864_p8 = scmp.ne.s32.totalorder %s1217_s2, %s863_s11  ;;  %s33_s8 = int_to_ptr.vmem [resolvable:$true] %s32_s8 }
  0x14   :  { %p867_p9 = scmp.lt.u32.totalorder %s863_s11, %s1217_s2 }
  0x16   :  { %p869_p10 = pnand %p867_p9, %p864_p8 }
  0x18   :  { %872 = shalt.err (!%p869_p10)
}
  0x19   :  { %s873_s16 = scalar_lea.vmem %s33_s8, 16  ;;  %s877_s1 = scalar_lea.vmem %s33_s8, 32 }
  0x1a   :  { %p874_p11 = scmp.ne.s32.totalorder %s33_s8, %s873_s16  ;;  %p878_p12 = scmp.lt.s32.totalorder %s33_s8, %s33_s8 }
  0x1b   :  { %p879_p13 = scmp.lt.s32.totalorder %s877_s1, %s873_s16 }
  0x1d   :  { %p880_p0 = por %p879_p13, %p878_p12 }
  0x1f   :  { %p881_p1 = pnand %p880_p0, %p874_p11 }
  0x21   :  { %884 = shalt.err (!%p881_p1)
}
  0x22   :  { %35 = dma.hbm_to_vmem [thread:$0]  %s1217_s2, 16, %s33_s8, [#allocation6]  }
  0x23   :  { %885 = dma.done.wait [#allocation4], 128  }
  0x24   :  { %886 = vsyncadd [#allocation4], 4294967168 }
  0x25   :  { %887 = dma.done.wait [#allocation6], 16  }
  0x26   :  { %888 = vsyncadd [#allocation6], 4294967280  ;;  %v824_v0 = vld [vmem:[#allocation3] sm:$0xff]   ;;  %vm235_vm0 = vcmask 130048   ;;  %v827_v3 = vld [vmem:[%s1215_s0 + $0x8] sm:$0xff]  }
  0x27   :  { %v825_v1 = vld [vmem:[%s1215_s0] sm:$0xff]   ;;  %784 = vmatprep.subr.bf16.mxu0 %v824_v0  ;;  %818 = vmatprep.subr.bf16.mxu1 %v824_v0  ;;  %v828_v4 = vld [vmem:[%s1215_s0 + $0x48] sm:$0xff]   ;;  %v829_v5 = vld [vmem:[%s1215_s0 + $0x10] sm:$0xff]  }
  0x28   :  { %v826_v2 = vld [vmem:[%s1215_s0 + $0x40] sm:$0xff]   ;;  %785 = vmatpush3.bf16.msra.mxu0 %v824_v0  ;;  %819 = vmatpush3.bf16.msra.mxu1 %v824_v0  ;;  %v830_v6 = vld [vmem:[%s1215_s0 + $0x50] sm:$0xff]   ;;  %v831_v7 = vld [vmem:[%s1215_s0 + $0x18] sm:$0xff]  }
  0x29   :  { %786 = vmatprep.mubr.msk.bf16.mxu0 %vm235_vm0, %v825_v1  ;;  %802 = vmatprep.mubr.msk.bf16.mxu1 %vm235_vm0, %v826_v2  ;;  %v832_v8 = vld [vmem:[%s1215_s0 + $0x58] sm:$0xff]   ;;  %v833_v9 = vld [vmem:[%s1215_s0 + $0x20] sm:$0xff]   ;;  %v835_v11 = vld [vmem:[%s1215_s0 + $0x28] sm:$0xff]  }
  0x2a   :  { %v834_v10 = vld [vmem:[%s1215_s0 + $0x60] sm:$0xff]   ;;  %v836_v12 = vld [vmem:[%s1215_s0 + $0x68] sm:$0xff]   ;;  %v837_v13 = vld [vmem:[%s1215_s0 + $0x30] sm:$0xff]  }
  0x2b   :  { %787 = vmatmul.mubr.msk.bf16.vlgmr.msra.gmra.mrb[0].mxu0 %vm235_vm0, %v827_v3  ;;  %803 = vmatmul.mubr.msk.bf16.vlgmr.msra.gmra.mrb[0].mxu1 %vm235_vm0, %v828_v4  ;;  %v838_v14 = vld [vmem:[%s1215_s0 + $0x70] sm:$0xff]   ;;  %v839_v15 = vld [vmem:[%s1215_s0 + $0x38] sm:$0xff]   ;;  %v1011_v17 = vld [vmem:[#allocation5] ss:$0 sm:$0xff] }
  0x2c   :  { %790 = vmatprep.mubr.msk.bf16.mxu0 %vm235_vm0, %v829_v5  ;;  %806 = vmatprep.mubr.msk.bf16.mxu1 %vm235_vm0, %v830_v6  ;;  %v840_v16 = vld [vmem:[%s1215_s0 + $0x78] sm:$0xff]   ;;  %v1018_v24 = vld [vmem:[%s1218_s3] ss:$0 sm:$0xff] }
  0x2d   :  { %v1027_v35 = vld [vmem:[%s1219_s4] ss:$0 sm:$0xff] }
  0x33   :  { %791 = vmatmul.mubr.msk.bf16.gmra.mrb[4].mxu0 %vm235_vm0, %v831_v7  ;;  %807 = vmatmul.mubr.msk.bf16.gmra.mrb[4].mxu1 %vm235_vm0, %v832_v8 }
  0x34   :  { %794 = vmatprep.mubr.msk.bf16.mxu0 %vm235_vm0, %v833_v9  ;;  %810 = vmatprep.mubr.msk.bf16.mxu1 %vm235_vm0, %v834_v10 }
  0x3b   :  { %795 = vmatmul.mubr.msk.bf16.gmra.mrb[8].mxu0 %vm235_vm0, %v835_v11  ;;  %811 = vmatmul.mubr.msk.bf16.gmra.mrb[8].mxu1 %vm235_vm0, %v836_v12 }
  0x3c   :  { %798 = vmatprep.mubr.msk.bf16.mxu0 %vm235_vm0, %v837_v13  ;;  %814 = vmatprep.mubr.msk.bf16.mxu1 %vm235_vm0, %v838_v14 }
  0x43   :  { %799 = vmatmul.mubr.msk.bf16.gmra.mrb[12].mxu0 %vm235_vm0, %v839_v15  ;;  %815 = vmatmul.mubr.msk.bf16.gmra.mrb[12].mxu1 %vm235_vm0, %v840_v16 }
  0xfe   :  { %v788_v18 = vpop.f32.mrb[0].mxu0  ;;  %v804_v19 = vpop.f32.mrb[0].mxu1 }
  0xff   :  { %v553_v20 = vadd.f32 %v788_v18, %v1011_v17  ;;  %v569_v21 = vadd.f32 %v804_v19, %v1011_v17  ;;  %v318_v22 = vpop.f32.mrb[1].mxu0  ;;  %v382_v23 = vpop.f32.mrb[1].mxu1 }
 0x100   :  { %v551_v25 = vadd.f32 %v1011_v17, %v318_v22  ;;  %v567_v26 = vadd.f32 %v1011_v17, %v382_v23  ;;  %v789_v27 = vpop.f32.mrb[2].mxu0  ;;  %v805_v28 = vpop.f32.mrb[2].mxu1 }
 0x101   :  { %v585_v29 = vmax.f32 %v553_v20, 0.0  ;;  %v601_v30 = vmax.f32 %v569_v21, 0.0  ;;  %v554_v31 = vadd.f32 %v789_v27, %v1011_v17  ;;  %v570_v32 = vadd.f32 %v805_v28, %v1011_v17  ;;  %v321_v33 = vpop.f32.mrb[3].mxu0  ;;  %v385_v34 = vpop.f32.mrb[3].mxu1 }
 0x102   :  { %v583_v36 = vmax.f32 %v551_v25, 0.0  ;;  %v599_v37 = vmax.f32 %v567_v26, 0.0  ;;  %v552_v38 = vadd.f32 %v1011_v17, %v321_v33  ;;  %v568_v39 = vadd.f32 %v1011_v17, %v385_v34 }
 0x103   :  { %v624_v40 = vmul.f32 %v1018_v24, %v585_v29  ;;  %v640_v41 = vmul.f32 %v1018_v24, %v601_v30  ;;  %v586_v42 = vmax.f32 %v554_v31, 0.0  ;;  %v602_v43 = vmax.f32 %v570_v32, 0.0 }
 0x104   :  { %v622_v44 = vmul.f32 %v1018_v24, %v583_v36  ;;  %v638_v45 = vmul.f32 %v1018_v24, %v599_v37  ;;  %v584_v46 = vmax.f32 %v552_v38, 0.0  ;;  %v600_v47 = vmax.f32 %v568_v39, 0.0 }
 0x105   :  { %v663_v48 = vadd.f32 %v1027_v35, %v624_v40  ;;  %v679_v49 = vadd.f32 %v1027_v35, %v640_v41  ;;  %v625_v50 = vmul.f32 %v1018_v24, %v586_v42  ;;  %v641_v51 = vmul.f32 %v1018_v24, %v602_v43 }
 0x106   :  { %v661_v52 = vadd.f32 %v1027_v35, %v622_v44  ;;  %v677_v53 = vadd.f32 %v1027_v35, %v638_v45  ;;  %v623_v54 = vmul.f32 %v1018_v24, %v584_v46  ;;  %v639_v55 = vmul.f32 %v1018_v24, %v600_v47  ;;  %v792_v56 = vpop.f32.mrb[4].mxu0  ;;  %v808_v57 = vpop.f32.mrb[4].mxu1 }
 0x107   :  { %695 = vst [vmem:[%s1220_s5 + $0x10] sm:$0xff] %v663_v48  ;;  %711 = vst [vmem:[%s1220_s5 + $0x90] sm:$0xff] %v679_v49  ;;  %v664_v58 = vadd.f32 %v1027_v35, %v625_v50  ;;  %v680_v59 = vadd.f32 %v1027_v35, %v641_v51  ;;  %v557_v60 = vadd.f32 %v792_v56, %v1011_v17  ;;  %v334_v62 = vpop.f32.mrb[5].mxu0  ;;  %v398_v63 = vpop.f32.mrb[5].mxu1 }
 0x108   :  { %v573_v61 = vadd.f32 %v808_v57, %v1011_v17  ;;  %693 = vst [vmem:[%s1220_s5] sm:$0xff] %v661_v52  ;;  %709 = vst [vmem:[%s1220_s5 + $0x80] sm:$0xff] %v677_v53  ;;  %v662_v0 = vadd.f32 %v1027_v35, %v623_v54  ;;  %v678_v1 = vadd.f32 %v1027_v35, %v639_v55  ;;  %v793_v4 = vpop.f32.mrb[6].mxu0  ;;  %v809_v5 = vpop.f32.mrb[6].mxu1 }
 0x109   :  { %v555_v2 = vadd.f32 %v1011_v17, %v334_v62  ;;  %v571_v3 = vadd.f32 %v1011_v17, %v398_v63  ;;  %696 = vst [vmem:[%s1220_s5 + $0x18] sm:$0xff] %v664_v58  ;;  %712 = vst [vmem:[%s1220_s5 + $0x98] sm:$0xff] %v680_v59  ;;  %v589_v6 = vmax.f32 %v557_v60, 0.0  ;;  %v558_v8 = vadd.f32 %v793_v4, %v1011_v17  ;;  %v337_v10 = vpop.f32.mrb[7].mxu0  ;;  %v401_v11 = vpop.f32.mrb[7].mxu1 }
 0x10a   :  { %v605_v7 = vmax.f32 %v573_v61, 0.0  ;;  %v574_v9 = vadd.f32 %v809_v5, %v1011_v17  ;;  %694 = vst [vmem:[%s1220_s5 + $0x8] sm:$0xff] %v662_v0  ;;  %710 = vst [vmem:[%s1220_s5 + $0x88] sm:$0xff] %v678_v1  ;;  %v556_v14 = vadd.f32 %v1011_v17, %v337_v10  ;;  %v572_v15 = vadd.f32 %v1011_v17, %v401_v11 }
 0x10b   :  { %v587_v12 = vmax.f32 %v555_v2, 0.0  ;;  %v603_v13 = vmax.f32 %v571_v3, 0.0  ;;  %v628_v16 = vmul.f32 %v1018_v24, %v589_v6  ;;  %v590_v19 = vmax.f32 %v558_v8, 0.0 }
 0x10c   :  { %v644_v18 = vmul.f32 %v1018_v24, %v605_v7  ;;  %v606_v20 = vmax.f32 %v574_v9, 0.0  ;;  %v588_v23 = vmax.f32 %v556_v14, 0.0  ;;  %v604_v25 = vmax.f32 %v572_v15, 0.0 }
 0x10d   :  { %v626_v21 = vmul.f32 %v1018_v24, %v587_v12  ;;  %v642_v22 = vmul.f32 %v1018_v24, %v603_v13  ;;  %v667_v26 = vadd.f32 %v1027_v35, %v628_v16  ;;  %v629_v28 = vmul.f32 %v1018_v24, %v590_v19 }
 0x10e   :  { %v683_v27 = vadd.f32 %v1027_v35, %v644_v18  ;;  %v645_v29 = vmul.f32 %v1018_v24, %v606_v20  ;;  %v627_v32 = vmul.f32 %v1018_v24, %v588_v23  ;;  %v643_v33 = vmul.f32 %v1018_v24, %v604_v25  ;;  %v796_v34 = vpop.f32.mrb[8].mxu0  ;;  %v812_v36 = vpop.f32.mrb[8].mxu1 }
 0x10f   :  { %v665_v30 = vadd.f32 %v1027_v35, %v626_v21  ;;  %v681_v31 = vadd.f32 %v1027_v35, %v642_v22  ;;  %699 = vst [vmem:[%s1220_s5 + $0x30] sm:$0xff] %v667_v26  ;;  %v668_v37 = vadd.f32 %v1027_v35, %v629_v28  ;;  %v561_v39 = vadd.f32 %v796_v34, %v1011_v17  ;;  %v350_v41 = vpop.f32.mrb[9].mxu0  ;;  %v414_v42 = vpop.f32.mrb[9].mxu1 }
 0x110   :  { %715 = vst [vmem:[%s1220_s5 + $0xb0] sm:$0xff] %v683_v27  ;;  %v684_v38 = vadd.f32 %v1027_v35, %v645_v29  ;;  %v577_v40 = vadd.f32 %v812_v36, %v1011_v17  ;;  %v666_v43 = vadd.f32 %v1027_v35, %v627_v32  ;;  %v682_v44 = vadd.f32 %v1027_v35, %v643_v33  ;;  %v797_v47 = vpop.f32.mrb[10].mxu0  ;;  %v813_v48 = vpop.f32.mrb[10].mxu1 }
 0x111   :  { %697 = vst [vmem:[%s1220_s5 + $0x20] sm:$0xff] %v665_v30  ;;  %713 = vst [vmem:[%s1220_s5 + $0xa0] sm:$0xff] %v681_v31  ;;  %v559_v45 = vadd.f32 %v1011_v17, %v350_v41  ;;  %v575_v46 = vadd.f32 %v1011_v17, %v414_v42  ;;  %v593_v49 = vmax.f32 %v561_v39, 0.0  ;;  %v562_v51 = vadd.f32 %v797_v47, %v1011_v17  ;;  %v353_v53 = vpop.f32.mrb[11].mxu0  ;;  %v417_v54 = vpop.f32.mrb[11].mxu1 }
 0x112   :  { %700 = vst [vmem:[%s1220_s5 + $0x38] sm:$0xff] %v668_v37  ;;  %716 = vst [vmem:[%s1220_s5 + $0xb8] sm:$0xff] %v684_v38  ;;  %v609_v50 = vmax.f32 %v577_v40, 0.0  ;;  %v578_v52 = vadd.f32 %v813_v48, %v1011_v17  ;;  %v560_v57 = vadd.f32 %v1011_v17, %v353_v53  ;;  %v576_v58 = vadd.f32 %v1011_v17, %v417_v54 }
 0x113   :  { %698 = vst [vmem:[%s1220_s5 + $0x28] sm:$0xff] %v666_v43  ;;  %714 = vst [vmem:[%s1220_s5 + $0xa8] sm:$0xff] %v682_v44  ;;  %v591_v55 = vmax.f32 %v559_v45, 0.0  ;;  %v607_v56 = vmax.f32 %v575_v46, 0.0  ;;  %v632_v59 = vmul.f32 %v1018_v24, %v593_v49  ;;  %v594_v61 = vmax.f32 %v562_v51, 0.0 }
 0x114   :  { %v648_v60 = vmul.f32 %v1018_v24, %v609_v50  ;;  %v610_v62 = vmax.f32 %v578_v52, 0.0  ;;  %v592_v1 = vmax.f32 %v560_v57, 0.0  ;;  %v608_v2 = vmax.f32 %v576_v58, 0.0 }
 0x115   :  { %v630_v63 = vmul.f32 %v1018_v24, %v591_v55  ;;  %v646_v0 = vmul.f32 %v1018_v24, %v607_v56  ;;  %v671_v3 = vadd.f32 %v1027_v35, %v632_v59  ;;  %v633_v5 = vmul.f32 %v1018_v24, %v594_v61 }
 0x116   :  { %v687_v4 = vadd.f32 %v1027_v35, %v648_v60  ;;  %v649_v6 = vmul.f32 %v1018_v24, %v610_v62  ;;  %v631_v9 = vmul.f32 %v1018_v24, %v592_v1  ;;  %v647_v10 = vmul.f32 %v1018_v24, %v608_v2  ;;  %v800_v11 = vpop.f32.mrb[12].mxu0  ;;  %v816_v12 = vpop.f32.mrb[12].mxu1 }
 0x117   :  { %v669_v7 = vadd.f32 %v1027_v35, %v630_v63  ;;  %v685_v8 = vadd.f32 %v1027_v35, %v646_v0  ;;  %703 = vst [vmem:[%s1220_s5 + $0x50] sm:$0xff] %v671_v3  ;;  %v672_v13 = vadd.f32 %v1027_v35, %v633_v5  ;;  %v565_v15 = vadd.f32 %v800_v11, %v1011_v17  ;;  %v366_v18 = vpop.f32.mrb[13].mxu0  ;;  %v430_v19 = vpop.f32.mrb[13].mxu1 }
 0x118   :  { %719 = vst [vmem:[%s1220_s5 + $0xd0] sm:$0xff] %v687_v4  ;;  %v688_v14 = vadd.f32 %v1027_v35, %v649_v6  ;;  %v581_v16 = vadd.f32 %v816_v12, %v1011_v17  ;;  %v670_v20 = vadd.f32 %v1027_v35, %v631_v9  ;;  %v686_v21 = vadd.f32 %v1027_v35, %v647_v10  ;;  %v801_v25 = vpop.f32.mrb[14].mxu0  ;;  %v817_v26 = vpop.f32.mrb[14].mxu1 }
 0x119   :  { %701 = vst [vmem:[%s1220_s5 + $0x40] sm:$0xff] %v669_v7  ;;  %717 = vst [vmem:[%s1220_s5 + $0xc0] sm:$0xff] %v685_v8  ;;  %v563_v22 = vadd.f32 %v1011_v17, %v366_v18  ;;  %v579_v23 = vadd.f32 %v1011_v17, %v430_v19  ;;  %v597_v27 = vmax.f32 %v565_v15, 0.0  ;;  %v566_v29 = vadd.f32 %v801_v25, %v1011_v17  ;;  %v369_v31 = vpop.f32.mrb[15].mxu0  ;;  %v433_v32 = vpop.f32.mrb[15].mxu1 }
 0x11a   :  { %704 = vst [vmem:[%s1220_s5 + $0x58] sm:$0xff] %v672_v13  ;;  %720 = vst [vmem:[%s1220_s5 + $0xd8] sm:$0xff] %v688_v14  ;;  %v613_v28 = vmax.f32 %v581_v16, 0.0  ;;  %v582_v30 = vadd.f32 %v817_v26, %v1011_v17  ;;  %v564_v36 = vadd.f32 %v1011_v17, %v369_v31  ;;  %v580_v37 = vadd.f32 %v1011_v17, %v433_v32 }
 0x11b   :  { %702 = vst [vmem:[%s1220_s5 + $0x48] sm:$0xff] %v670_v20  ;;  %718 = vst [vmem:[%s1220_s5 + $0xc8] sm:$0xff] %v686_v21  ;;  %v595_v33 = vmax.f32 %v563_v22, 0.0  ;;  %v611_v34 = vmax.f32 %v579_v23, 0.0  ;;  %v636_v38 = vmul.f32 %v1018_v24, %v597_v27  ;;  %v598_v40 = vmax.f32 %v566_v29, 0.0 }
 0x11c   :  { %v652_v39 = vmul.f32 %v1018_v24, %v613_v28  ;;  %v614_v41 = vmax.f32 %v582_v30, 0.0  ;;  %v596_v44 = vmax.f32 %v564_v36, 0.0  ;;  %v612_v45 = vmax.f32 %v580_v37, 0.0 }
 0x11d   :  { %v634_v42 = vmul.f32 %v1018_v24, %v595_v33  ;;  %v650_v43 = vmul.f32 %v1018_v24, %v611_v34  ;;  %v675_v46 = vadd.f32 %v1027_v35, %v636_v38  ;;  %v637_v48 = vmul.f32 %v1018_v24, %v598_v40 }
 0x11e   :  { %v691_v47 = vadd.f32 %v1027_v35, %v652_v39  ;;  %v653_v17 = vmul.f32 %v1018_v24, %v614_v41  ;;  %v635_v51 = vmul.f32 %v1018_v24, %v596_v44  ;;  %v651_v52 = vmul.f32 %v1018_v24, %v612_v45 }
 0x11f   :  { %v673_v49 = vadd.f32 %v1027_v35, %v634_v42  ;;  %v689_v50 = vadd.f32 %v1027_v35, %v650_v43  ;;  %707 = vst [vmem:[%s1220_s5 + $0x70] sm:$0xff] %v675_v46  ;;  %v676_v53 = vadd.f32 %v1027_v35, %v637_v48 }
 0x120   :  { %723 = vst [vmem:[%s1220_s5 + $0xf0] sm:$0xff] %v691_v47  ;;  %v692_v54 = vadd.f32 %v1027_v35, %v653_v17  ;;  %v674_v24 = vadd.f32 %v1027_v35, %v635_v51  ;;  %v690_v55 = vadd.f32 %v1027_v35, %v651_v52 }
 0x121   :  { %705 = vst [vmem:[%s1220_s5 + $0x60] sm:$0xff] %v673_v49  ;;  %721 = vst [vmem:[%s1220_s5 + $0xe0] sm:$0xff] %v689_v50 }
 0x122   :  { %708 = vst [vmem:[%s1220_s5 + $0x78] sm:$0xff] %v676_v53  ;;  %724 = vst [vmem:[%s1220_s5 + $0xf8] sm:$0xff] %v692_v54 }
 0x123   :  { %706 = vst [vmem:[%s1220_s5 + $0x68] sm:$0xff] %v674_v24  ;;  %722 = vst [vmem:[%s1220_s5 + $0xe8] sm:$0xff] %v690_v55 }
 0x124   :  { %729 = vsyncpa [#allocation4], 1 }
 0x125   :  { %730 = vsyncpa [#allocation6], 1 }

// kernel: _lambda_.5
= control target key start
LH: loop header
LB: loop body
LE: loop exit
PB: predicated region body
PF: predicated region fallthrough
CT: control target
= control target key end

     0   :  { %s1606_s18 = smov 0   ;;  %s1608_s19 = smov 0   ;;  %s1876_s0 = inlined_call_operand.vmem [shape: bf16[64,1152], index: 0, kind: input, shape index: {}]   ;;  %s1877_s1 = inlined_call_operand.vmem [shape: bf16[1152,256], index: 1, kind: input, shape index: {}]   ;;  %s1878_s2 = inlined_call_operand.vmem [shape: f32[1,256], index: 2, kind: input, shape index: {}]   ;;  %s1879_s3 = inlined_call_operand.vmem [shape: f32[1,256], index: 3, kind: input, shape index: {}]   ;;  %s1880_s4 = inlined_call_operand.vmem [shape: f32[1,256], index: 4, kind: input, shape index: {}]   ;;  %s1881_s5 = inlined_call_operand.vmem [shape: f32[64,256], index: 5, kind: output, shape index: {}]  }
   0x1   :  { %s1610_s20 = smov 0   ;;  %s1612_s21 = smov 0  }
   0x2   :  { %s1614_s22 = smov 0  }
   0x3 LB: > { %s27_s23 = sadd.s32 1, %s1568_s21  ;;  %p50_p1 = scmp.ne.s32.totalorder %s1560_s19, %s1556_s18  ;;  %s1572_s22 = sphi %s1614_s22, %s15_s22   ;;  %s1568_s21 = sphi %s1612_s21, %s1885_s21   ;;  %s1564_s20 = sphi %s1610_s20, %s1884_s20   ;;  %s1560_s19 = sphi %s1608_s19, %s1883_s19   ;;  %s1556_s18 = sphi %s1606_s18, %s1882_s18  }
   0x4   : > { %p28_p0 = scmp.ge.s32.totalorder %s27_s23, 3  ;;  %p51_p2 = scmp.eq.s32.totalorder %s1572_s22, 0 }
   0x5   : > { %s43_s25 = sadd.s32 1, %s1560_s19  ;;  %p1297_p5 = scmp.ge.s32.totalorder %s1572_s22, 3 }
   0x6   : > { %s1887_s23 = smov (%p28_p0, %s27_s23), 0  ;;  %p52_p3 = por %p51_p2, %p50_p1 }
   0x7   : > { %s39_s24 = ssub.s32 %s1568_s21, %s1887_s23  ;;  %234 = sbr.rel (%p1297_p5) target bundleno = 28 (0x1c), region = 28 }
   0x8   : > { %p41_p4 = scmp.eq.s32.totalorder %s39_s24, 0 }
   0xa   : > { %s1641_s26 = scalar_select %p41_p4, %s1560_s19, %s43_s25  }
   0xe   : > { %237 = sbr.rel (!%p52_p3) target bundleno = 28 (0x1c), region = 32  ;;  %s239_s27 = sand.u32 (%p52_p3), 1, %s1560_s19  }
   0xf   : > { %s1384_s28 = smul.u32 (%p52_p3), 12, %s1568_s21 }
  0x10   : > { %s1402_s29 = smul.u32 (%p52_p3), 96, %s239_s27 }
  0x11   : > { %s1649_s7 = scalar_lea.vmem (%p52_p3), %s1876_s0, %s1384_s28 }
  0x12   : > { %v262_v0 = vld [vmem:[%s1649_s7] sm:$0xff] (%p52_p3)  ;;  %v266_v2 = vld [vmem:[%s1649_s7 + $0x48] sm:$0xff] (%p52_p3)  ;;  %s241_s8 = scalar_lea.vmem (%p52_p3), [#allocation3], %s1402_s29  ;;  %v270_v4 = vld [vmem:[%s1649_s7 + $0x90] sm:$0xff] (%p52_p3) }
  0x13   : > { %v264_v1 = vld [vmem:[%s1649_s7 + $0x24] sm:$0xff] (%p52_p3)  ;;  %263 = vst [vmem:[%s241_s8] sm:$0xff] (%p52_p3), %v262_v0  ;;  %267 = vst [vmem:[%s241_s8 + $0x18] sm:$0xff] (%p52_p3), %v266_v2  ;;  %v268_v3 = vld [vmem:[%s1649_s7 + $0x6c] sm:$0xff] (%p52_p3) }
  0x14   : > { %265 = vst [vmem:[%s241_s8 + $0xc] sm:$0xff] (%p52_p3), %v264_v1  ;;  %v272_v5 = vld [vmem:[%s1649_s7 + $0xb4] sm:$0xff] (%p52_p3)  ;;  %269 = vst [vmem:[%s241_s8 + $0x24] sm:$0xff] (%p52_p3), %v268_v3  ;;  %v276_v7 = vld [vmem:[%s1649_s7 + $0xfc] sm:$0xff] (%p52_p3) }
  0x15   : > { %271 = vst [vmem:[%s241_s8 + $0x30] sm:$0xff] %v270_v4  ;;  %273 = vst [vmem:[%s241_s8 + $0x3c] sm:$0xff] %v272_v5  ;;  %v274_v6 = vld [vmem:[%s1649_s7 + $0xd8] sm:$0xff]  ;;  %v1299_v8 = vld [vmem:[%s1649_s7 + $0x8] sm:$0xf] }
  0x16   : > { %275 = vst [vmem:[%s241_s8 + $0x48] sm:$0xff] %v274_v6  ;;  %277 = vst [vmem:[%s241_s8 + $0x54] sm:$0xff] %v276_v7  ;;  %v1301_v9 = vld [vmem:[%s1649_s7 + $0x2c] sm:$0xf]  ;;  %v1303_v10 = vld [vmem:[%s1649_s7 + $0x50] sm:$0xf] }
  0x17   : > { %1300 = vst [vmem:[%s241_s8 + $0x8] sm:$0xf] %v1299_v8  ;;  %v1305_v11 = vld [vmem:[%s1649_s7 + $0x74] sm:$0xf]  ;;  %1302 = vst [vmem:[%s241_s8 + $0x14] sm:$0xf] %v1301_v9 }
  0x18   : > { %1304 = vst [vmem:[%s241_s8 + $0x20] sm:$0xf] %v1303_v10  ;;  %1306 = vst [vmem:[%s241_s8 + $0x2c] sm:$0xf] %v1305_v11  ;;  %v1307_v12 = vld [vmem:[%s1649_s7 + $0x98] sm:$0xf] }
  0x19   : > { %v1309_v13 = vld [vmem:[%s1649_s7 + $0xbc] sm:$0xf]  ;;  %v1311_v14 = vld [vmem:[%s1649_s7 + $0xe0] sm:$0xf]  ;;  %1308 = vst [vmem:[%s241_s8 + $0x38] sm:$0xf] %v1307_v12 }
  0x1a   : > { %1310 = vst [vmem:[%s241_s8 + $0x44] sm:$0xf] %v1309_v13  ;;  %1312 = vst [vmem:[%s241_s8 + $0x50] sm:$0xf] %v1311_v14  ;;  %v1313_v15 = vld [vmem:[%s1649_s7 + $0x104] sm:$0xf] }
  0x1b   : > { %1314 = vst [vmem:[%s241_s8 + $0x5c] sm:$0xf] %v1313_v15 }
  0x1c PF: > { %p1315_p6 = scmp.ge.s32.totalorder %s1572_s22, 1  ;;  %p320_p7 = scmp.lt.s32.totalorder %s1572_s22, 4 }
  0x1e   : > { %p321_p8 = pnand %p1315_p6, %p320_p7 }
  0x1f   : > { %s327_s9 = sand.u32 (!%p321_p8), 1, %s1556_s18   ;;  %s383_s10 = smul.u32 (!%p321_p8), 48, %s1564_s20 }
  0x20   : > { %324 = sbr.rel (%p321_p8) target bundleno = 374 (0x176), region = 62  ;;  %p1318_p10 = scmp.ne.s32.totalorder (!%p321_p8), %s1564_s20, 0 }
  0x21   : > { %s1403_s11 = smul.u32 (!%p321_p8), 96, %s327_s9  ;;  %p385_p9 = scmp.lt.s32.totalorder (!%p321_p8), %s383_s10, 143 }
  0x23   : > { %s1676_s16 = scalar_lea.vmem (!%p321_p8), [#allocation3], %s1403_s11 }
  0x27   : > { %s1889_s10 = smov (!%p385_p9, %s383_s10), 143  ;;  %426 = sbr.rel (%p1318_p10) target bundleno = 49 (0x31), region = 70 }
  0x28   : > { %s1385_s12 = sshll.u32 %s1889_s10, 3  ;;  %v1574_v16 = vmov (!%p1318_p10), 0.0  }
  0x29   : > { %s1674_s15 = scalar_lea.vmem %s1877_s1, %s1385_s12  ;;  %427 = vst [vmem:[#allocation2] sm:$0xff] (!%p1318_p10), %v1574_v16  ;;  %428 = vst [vmem:[#allocation2 + $0x8] sm:$0xff] (!%p1318_p10), %v1574_v16 }
  0x2a   : > { %429 = vst [vmem:[#allocation2 + $0x10] sm:$0xff] (!%p1318_p10), %v1574_v16  ;;  %430 = vst [vmem:[#allocation2 + $0x18] sm:$0xff] (!%p1318_p10), %v1574_v16 }
  0x2b   : > { %431 = vst [vmem:[#allocation2 + $0x20] sm:$0xff] (!%p1318_p10), %v1574_v16  ;;  %432 = vst [vmem:[#allocation2 + $0x28] sm:$0xff] (!%p1318_p10), %v1574_v16 }
  0x2c   : > { %433 = vst [vmem:[#allocation2 + $0x30] sm:$0xff] (!%p1318_p10), %v1574_v16  ;;  %434 = vst [vmem:[#allocation2 + $0x38] sm:$0xff] (!%p1318_p10), %v1574_v16 }
  0x2d   : > { %435 = vst [vmem:[#allocation2 + $0x40] sm:$0xff] (!%p1318_p10), %v1574_v16  ;;  %436 = vst [vmem:[#allocation2 + $0x48] sm:$0xff] (!%p1318_p10), %v1574_v16 }
  0x2e   : > { %437 = vst [vmem:[#allocation2 + $0x50] sm:$0xff] %v1574_v16  ;;  %438 = vst [vmem:[#allocation2 + $0x58] sm:$0xff] %v1574_v16 }
  0x2f   : > { %439 = vst [vmem:[#allocation2 + $0x60] sm:$0xff] %v1574_v16  ;;  %440 = vst [vmem:[#allocation2 + $0x68] sm:$0xff] %v1574_v16 }
  0x30   : > { %441 = vst [vmem:[#allocation2 + $0x70] sm:$0xff] %v1574_v16  ;;  %442 = vst [vmem:[#allocation2 + $0x78] sm:$0xff] %v1574_v16 }
  0x31 PF: > { %v1446_v17 = vld [vmem:[%s1674_s15 + $0x4] ss:$8 sps:$4 sm:$0xff]   ;;  %v1448_v18 = vld [vmem:[%s1674_s15] ss:$8 sps:$4 sm:$0xff]   ;;  %v1575_v19 = vmov 0   ;;  %p1379_p11 = scmp.ne.s32.totalorder %s1564_s20, 2 }
  0x32   : > { %932 = vmatprep.mubr.bf16.mxu0 %v1575_v19  ;;  %827 = vmatprep.subr.bf16.mxu1 %v1446_v17  ;;  %v1449_v20 = vld [vmem:[%s1674_s15 + $0x14] ss:$8 sps:$4 sm:$0xff]   ;;  %v1451_v21 = vld [vmem:[%s1674_s15 + $0x10] ss:$8 sps:$4 sm:$0xff]   ;;  %v1452_v22 = vld [vmem:[%s1674_s15 + $0x24] ss:$8 sps:$4 sm:$0xff]  }
  0x33   : > { %828 = vmatpush1.bf16.msra.mxu1 %v1448_v18  ;;  %v1454_v23 = vld [vmem:[%s1674_s15 + $0x20] ss:$8 sps:$4 sm:$0xff]   ;;  %v1455_v24 = vld [vmem:[%s1674_s15 + $0x34] ss:$8 sps:$4 sm:$0xff]   ;;  %v1457_v25 = vld [vmem:[%s1674_s15 + $0x30] ss:$8 sps:$4 sm:$0xff]  }
  0x34   : > { %829 = vmatprep.subr.bf16.mxu1 %v1449_v20  ;;  %v1470_v26 = vld [vmem:[%s1674_s15 + $0x104] ss:$8 sps:$4 sm:$0xff]   ;;  %v1472_v27 = vld [vmem:[%s1674_s15 + $0x100] ss:$8 sps:$4 sm:$0xff]   ;;  %v1476_v29 = vld [vmem:[%s1674_s15 + $0x114] ss:$8 sps:$4 sm:$0xff]  }
  0x35   : > { %v1458_v28 = vld [vmem:[%s1674_s15 + $0x44] ss:$8 sps:$4 sm:$0xff]   ;;  %900 = vmatprep.subr.bf16.mxu0 %v1470_v26  ;;  %v1478_v30 = vld [vmem:[%s1674_s15 + $0x110] ss:$8 sps:$4 sm:$0xff]   ;;  %v1460_v31 = vld [vmem:[%s1674_s15 + $0x40] ss:$8 sps:$4 sm:$0xff]  }
  0x36   : > { %901 = vmatpush1.bf16.msra.mxu0 %v1472_v27  ;;  %v1461_v32 = vld [vmem:[%s1674_s15 + $0x54] ss:$8 sps:$4 sm:$0xff]   ;;  %v1482_v33 = vld [vmem:[%s1674_s15 + $0x124] ss:$8 sps:$4 sm:$0xff]   ;;  %v1484_v34 = vld [vmem:[%s1674_s15 + $0x120] ss:$8 sps:$4 sm:$0xff]  }
  0x37   : > { %830 = vmatpush1.bf16.msra.mxu1 %v1451_v21  ;;  %902 = vmatprep.subr.bf16.mxu0 %v1476_v29  ;;  %v1463_v35 = vld [vmem:[%s1674_s15 + $0x50] ss:$8 sps:$4 sm:$0xff]   ;;  %v1488_v36 = vld [vmem:[%s1674_s15 + $0x134] ss:$8 sps:$4 sm:$0xff]   ;;  %v1464_v37 = vld [vmem:[%s1674_s15 + $0x64] ss:$8 sps:$4 sm:$0xff]  }
  0x38   : > { %831 = vmatprep.subr.bf16.mxu1 %v1452_v22  ;;  %v1490_v38 = vld [vmem:[%s1674_s15 + $0x130] ss:$8 sps:$4 sm:$0xff]   ;;  %v1466_v39 = vld [vmem:[%s1674_s15 + $0x60] ss:$8 sps:$4 sm:$0xff]   ;;  %v1494_v40 = vld [vmem:[%s1674_s15 + $0x144] ss:$8 sps:$4 sm:$0xff]  }
  0x39   : > { %v1467_v41 = vld [vmem:[%s1674_s15 + $0x74] ss:$8 sps:$4 sm:$0xff]   ;;  %v1496_v42 = vld [vmem:[%s1674_s15 + $0x140] ss:$8 sps:$4 sm:$0xff]   ;;  %v1469_v43 = vld [vmem:[%s1674_s15 + $0x70] ss:$8 sps:$4 sm:$0xff]  }
  0x3a   : > { %903 = vmatpush1.bf16.msra.mxu0 %v1478_v30  ;;  %v1500_v44 = vld [vmem:[%s1674_s15 + $0x154] ss:$8 sps:$4 sm:$0xff]   ;;  %v1473_v45 = vld [vmem:[%s1674_s15 + $0x84] ss:$8 sps:$4 sm:$0xff]   ;;  %v1502_v46 = vld [vmem:[%s1674_s15 + $0x150] ss:$8 sps:$4 sm:$0xff]  }
  0x3b   : > { %832 = vmatpush1.bf16.msra.mxu1 %v1454_v23  ;;  %904 = vmatprep.subr.bf16.mxu0 %v1482_v33  ;;  %v1475_v47 = vld [vmem:[%s1674_s15 + $0x80] ss:$8 sps:$4 sm:$0xff]   ;;  %v1506_v48 = vld [vmem:[%s1674_s15 + $0x164] ss:$8 sps:$4 sm:$0xff]   ;;  %v1479_v49 = vld [vmem:[%s1674_s15 + $0x94] ss:$8 sps:$4 sm:$0xff]  }
  0x3c   : > { %833 = vmatprep.subr.bf16.mxu1 %v1455_v24  ;;  %v1481_v50 = vld [vmem:[%s1674_s15 + $0x90] ss:$8 sps:$4 sm:$0xff]   ;;  %v1508_v51 = vld [vmem:[%s1674_s15 + $0x160] ss:$8 sps:$4 sm:$0xff]   ;;  %v1512_v53 = vld [vmem:[%s1674_s15 + $0x174] ss:$8 sps:$4 sm:$0xff]  }
  0x3d   : > { %v1521_v52 = vld [vmem:[%s1676_s16 + $0x4] ss:$12 sps:$4 sm:$0xff]   ;;  %v1487_v56 = vld [vmem:[%s1674_s15 + $0xa0] ss:$8 sps:$4 sm:$0xff]   ;;  %v1491_v57 = vld [vmem:[%s1674_s15 + $0xb4] ss:$8 sps:$4 sm:$0xff]  }
  0x3e   : > { %905 = vmatpush1.bf16.msra.mxu0 %v1484_v34  ;;  %v1485_v54 = vld [vmem:[%s1674_s15 + $0xa4] ss:$8 sps:$4 sm:$0xff]   ;;  %859 = vmatprep.mubr.bf16.mxu1 %v1521_v52  ;;  %v1514_v55 = vld [vmem:[%s1674_s15 + $0x170] ss:$8 sps:$4 sm:$0xff]   ;;  %v1518_v58 = vld [vmem:[%s1676_s16 + $0x8] ss:$12 sps:$4 sm:$0xff]  }
  0x3f   : > { %834 = vmatpush1.bf16.msra.mxu1 %v1457_v25  ;;  %906 = vmatprep.subr.bf16.mxu0 %v1488_v36  ;;  %v1493_v59 = vld [vmem:[%s1674_s15 + $0xb0] ss:$8 sps:$4 sm:$0xff]   ;;  %v1497_v60 = vld [vmem:[%s1674_s15 + $0xc4] ss:$8 sps:$4 sm:$0xff]   ;;  %v1499_v61 = vld [vmem:[%s1674_s15 + $0xc0] ss:$8 sps:$4 sm:$0xff]  }
  0x40   : > { %835 = vmatprep.subr.bf16.mxu1 %v1458_v28  ;;  %v1503_v62 = vld [vmem:[%s1674_s15 + $0xd4] ss:$8 sps:$4 sm:$0xff]   ;;  %v1522_v63 = vld [vmem:[%s1676_s16 + $0x20] ss:$12 sps:$4 sm:$0xff]   ;;  %v1505_v0 = vld [vmem:[%s1674_s15 + $0xd0] ss:$8 sps:$4 sm:$0xff]  }
  0x41   : > { %v1509_v1 = vld [vmem:[%s1674_s15 + $0xe4] ss:$8 sps:$4 sm:$0xff]   ;;  %v1511_v2 = vld [vmem:[%s1674_s15 + $0xe0] ss:$8 sps:$4 sm:$0xff]   ;;  %v1515_v3 = vld [vmem:[%s1674_s15 + $0xf4] ss:$8 sps:$4 sm:$0xff]  }
  0x42   : > { %907 = vmatpush1.bf16.msra.mxu0 %v1490_v38  ;;  %v1526_v4 = vld [vmem:[%s1676_s16 + $0x38] ss:$12 sps:$4 sm:$0xff]   ;;  %v1519_v6 = vld [vmem:[%s1676_s16] ss:$12 sps:$4 sm:$0xff]   ;;  %v1523_v7 = vld [vmem:[%s1676_s16 + $0x1c] ss:$12 sps:$4 sm:$0xff]  }
  0x43   : > { %836 = vmatpush1.bf16.msra.mxu1 %v1460_v31  ;;  %908 = vmatprep.subr.bf16.mxu0 %v1494_v40  ;;  %v1517_v5 = vld [vmem:[%s1674_s15 + $0xf0] ss:$8 sps:$4 sm:$0xff]   ;;  %v1527_v10 = vld [vmem:[%s1676_s16 + $0x34] ss:$12 sps:$4 sm:$0xff]   ;;  %v444_v29 = vld [vmem:[#allocation2 + $0x8] sm:$0xff] }
  0x44   : > { %837 = vmatprep.subr.bf16.mxu1 %v1461_v32  ;;  %v1530_v8 = vld [vmem:[%s1676_s16 + $0x50] ss:$12 sps:$4 sm:$0xff]   ;;  %v1525_v9 = vld [vmem:[%s1676_s16 + $0x18] ss:$12 sps:$4 sm:$0xff]   ;;  %v1533_v13 = vld [vmem:[%s1676_s16 + $0x48] ss:$12 sps:$4 sm:$0xff]  }
  0x45   : > { %v1529_v11 = vld [vmem:[%s1676_s16 + $0x30] ss:$12 sps:$4 sm:$0xff]   ;;  %v1531_v12 = vld [vmem:[%s1676_s16 + $0x4c] ss:$12 sps:$4 sm:$0xff]   ;;  %v443_v26 = vld [vmem:[#allocation2] sm:$0xff] }
  0x46   : > { %909 = vmatpush1.bf16.msra.mxu0 %v1496_v42  ;;  %v445_v32 = vld [vmem:[#allocation2 + $0x10] sm:$0xff]  ;;  %v446_v36 = vld [vmem:[#allocation2 + $0x18] sm:$0xff] }
  0x47   : > { %838 = vmatpush1.bf16.msra.mxu1 %v1463_v35  ;;  %910 = vmatprep.subr.bf16.mxu0 %v1500_v44  ;;  %v449_v52 = vld [vmem:[#allocation2 + $0x30] sm:$0xff] }
  0x48   : > { %839 = vmatprep.subr.bf16.mxu1 %v1464_v37 }
  0x4a   : > { %911 = vmatpush1.bf16.msra.mxu0 %v1502_v46  ;;  %v447_v46 = vld [vmem:[#allocation2 + $0x20] sm:$0xff] }
  0x4b   : > { %840 = vmatpush1.bf16.msra.mxu1 %v1466_v39  ;;  %912 = vmatprep.subr.bf16.mxu0 %v1506_v48 }
  0x4c   : > { %841 = vmatprep.subr.bf16.mxu1 %v1467_v41 }
  0x4e   : > { %913 = vmatpush1.bf16.msra.mxu0 %v1508_v51 }
  0x4f   : > { %842 = vmatpush1.bf16.msra.mxu1 %v1469_v43  ;;  %914 = vmatprep.subr.bf16.mxu0 %v1512_v53 }
  0x50   : > { %843 = vmatprep.subr.bf16.mxu1 %v1473_v45 }
  0x52   : > { %915 = vmatpush1.bf16.msra.mxu0 %v1514_v55 }
  0x53   : > { %844 = vmatpush1.bf16.msra.mxu1 %v1475_v47 }
  0x54   : > { %845 = vmatprep.subr.bf16.mxu1 %v1479_v49  ;;  %v448_v49 = vld [vmem:[#allocation2 + $0x28] sm:$0xff] }
  0x55   : > { %933 = vmatmul.mubr.bf16.vlgmr.msra.gmra.mrb[0].mxu0 %v1518_v58 }
  0x56   : > { %942 = vmatprep.mubr.bf16.mxu0 %v1575_v19 }
  0x57   : > { %846 = vmatpush1.bf16.msra.mxu1 %v1481_v50 }
  0x58   : > { %847 = vmatprep.subr.bf16.mxu1 %v1485_v54 }
  0x5b   : > { %848 = vmatpush1.bf16.msra.mxu1 %v1487_v56  ;;  %v450_v56 = vld [vmem:[#allocation2 + $0x38] sm:$0xff] }
  0x5c   : > { %849 = vmatprep.subr.bf16.mxu1 %v1491_v57 }
  0x5d   : > { %943 = vmatmul.mubr.bf16.gmra.mrb[4].mxu0 %v1522_v63 }
  0x5e   : > { %952 = vmatprep.mubr.bf16.mxu0 %v1575_v19 }
  0x5f   : > { %850 = vmatpush1.bf16.msra.mxu1 %v1493_v59 }
  0x60   : > { %851 = vmatprep.subr.bf16.mxu1 %v1497_v60 }
  0x63   : > { %852 = vmatpush1.bf16.msra.mxu1 %v1499_v61 }
  0x64   : > { %853 = vmatprep.subr.bf16.mxu1 %v1503_v62  ;;  %v451_v62 = vld [vmem:[#allocation2 + $0x40] sm:$0xff] }
  0x65   : > { %953 = vmatmul.mubr.bf16.gmra.mrb[8].mxu0 %v1526_v4  ;;  %v453_v4 = vld [vmem:[#allocation2 + $0x50] sm:$0xff] }
  0x66   : > { %962 = vmatprep.mubr.bf16.mxu0 %v1575_v19 }
  0x67   : > { %854 = vmatpush1.bf16.msra.mxu1 %v1505_v0 }
  0x68   : > { %855 = vmatprep.subr.bf16.mxu1 %v1509_v1  ;;  %v452_v1 = vld [vmem:[#allocation2 + $0x48] sm:$0xff] }
  0x6b   : > { %856 = vmatpush1.bf16.msra.mxu1 %v1511_v2 }
  0x6c   : > { %857 = vmatprep.subr.bf16.mxu1 %v1515_v3 }
  0x6d   : > { %963 = vmatmul.mubr.bf16.gmra.mrb[12].mxu0 %v1530_v8  ;;  %v454_v8 = vld [vmem:[#allocation2 + $0x58] sm:$0xff] }
  0x6f   : > { %858 = vmatpush1.bf16.msra.mxu1 %v1517_v5 }
  0x72   : > { %860 = vmatmul.mubr.bf16.vlgmr.msra.gmra.mrb[0].mxu1 %v1519_v6 }
  0x73   : > { %869 = vmatprep.mubr.bf16.mxu1 %v1523_v7 }
  0x7a   : > { %870 = vmatmul.mubr.bf16.gmra.mrb[4].mxu1 %v1525_v9 }
  0x7b   : > { %879 = vmatprep.mubr.bf16.mxu1 %v1527_v10 }
  0x82   : > { %880 = vmatmul.mubr.bf16.gmra.mrb[8].mxu1 %v1529_v11 }
  0x83   : > { %889 = vmatprep.mubr.bf16.mxu1 %v1531_v12 }
  0x8a   : > { %890 = vmatmul.mubr.bf16.gmra.mrb[12].mxu1 %v1533_v13 }
 0x128   : > { %v934_v14 = vpop.f32.mrb[0].mxu0 }
 0x129   : > { %v936_v15 = vpop.f32.mrb[1].mxu0 }
 0x12a   : > { %v938_v16 = vpop.f32.mrb[2].mxu0 }
 0x12b   : > { %v940_v17 = vpop.f32.mrb[3].mxu0 }
 0x130   : > { %v944_v18 = vpop.f32.mrb[4].mxu0 }
 0x131   : > { %v946_v19 = vpop.f32.mrb[5].mxu0 }
 0x132   : > { %v948_v20 = vpop.f32.mrb[6].mxu0 }
 0x133   : > { %v950_v21 = vpop.f32.mrb[7].mxu0 }
 0x138   : > { %v954_v22 = vpop.f32.mrb[8].mxu0 }
 0x139   : > { %v956_v23 = vpop.f32.mrb[9].mxu0 }
 0x13a   : > { %v958_v24 = vpop.f32.mrb[10].mxu0 }
 0x13b   : > { %v960_v25 = vpop.f32.mrb[11].mxu0 }
 0x140   : > { %v964_v38 = vpop.f32.mrb[12].mxu0 }
 0x141   : > { %v966_v41 = vpop.f32.mrb[13].mxu0 }
 0x142   : > { %v968_v43 = vpop.f32.mrb[14].mxu0 }
 0x143   : > { %v970_v45 = vpop.f32.mrb[15].mxu0 }
 0x145   : > { %v861_v27 = vpop.f32.mrb[0].mxu1 }
 0x146   : > { %v935_v28 = vadd.f32 %v934_v14, %v861_v27  ;;  %v863_v30 = vpop.f32.mrb[1].mxu1  ;;  %v455_v14 = vld [vmem:[#allocation2 + $0x60] sm:$0xff] }
 0x147   : > { %v937_v31 = vadd.f32 %v936_v15, %v863_v30  ;;  %v865_v33 = vpop.f32.mrb[2].mxu1  ;;  %v1027_v30 = vlaneseq (!%p1379_p11) }
 0x148   : > { %v973_v34 = vadd.f32 %v935_v28, %v443_v26  ;;  %v939_v35 = vadd.f32 %v938_v16, %v865_v33  ;;  %v867_v37 = vpop.f32.mrb[3].mxu1  ;;  %v1069_v33 = vld [vmem:[%s1879_s3] sm:$0x3] (!%p1379_p11) }
 0x149   : > { %v974_v39 = vadd.f32 %v937_v31, %v444_v29  ;;  %v941_v40 = vadd.f32 %v940_v17, %v867_v37  ;;  %v456_v17 = vld [vmem:[#allocation2 + $0x68] sm:$0xff]  ;;  %v1028_v31 = vshrl.u32 (!%p1379_p11), %v1027_v30, 7 }
 0x14a   : > { %989 = vst [vmem:[#allocation2] sm:$0xff] %v973_v34  ;;  %v975_v42 = vadd.f32 %v939_v35, %v445_v32  ;;  %v1025_v32 = vld [vmem:[%s1878_s2] sm:$0x3] (!%p1379_p11) }
 0x14b   : > { %990 = vst [vmem:[#allocation2 + $0x8] sm:$0xff] %v974_v39  ;;  %v976_v44 = vadd.f32 %v941_v40, %v446_v36  ;;  %v1029_v35 = vsub.s32 (!%p1379_p11), 0, %v1028_v31  ;;  %v1097_v36 = vld [vmem:[%s1880_s4] sm:$0x3] (!%p1379_p11) }
 0x14c   : > { %991 = vst [vmem:[#allocation2 + $0x10] sm:$0xff] %v975_v42 }
 0x14d   : > { %992 = vst [vmem:[#allocation2 + $0x18] sm:$0xff] %v976_v44  ;;  %v871_v47 = vpop.f32.mrb[4].mxu1  ;;  %v1753_v42 = vrot.slane (!%p1379_p11), %v1025_v32, %v1029_v35 }
 0x14e   : > { %v945_v48 = vadd.f32 %v944_v18, %v871_v47  ;;  %v873_v50 = vpop.f32.mrb[5].mxu1  ;;  %v1757_v47 = vrot.slane (!%p1379_p11), %v1069_v33, %v1029_v35 }
 0x14f   : > { %v947_v51 = vadd.f32 %v946_v19, %v873_v50  ;;  %v875_v53 = vpop.f32.mrb[6].mxu1 }
 0x150   : > { %v977_v54 = vadd.f32 %v945_v48, %v447_v46  ;;  %v949_v55 = vadd.f32 %v948_v20, %v875_v53  ;;  %v877_v57 = vpop.f32.mrb[7].mxu1  ;;  %v457_v20 = vld [vmem:[#allocation2 + $0x70] sm:$0xff]  ;;  %v1759_v48 = vrot.slane (!%p1379_p11), %v1097_v36, %v1029_v35 }
 0x151   : > { %v978_v58 = vadd.f32 %v947_v51, %v448_v49  ;;  %v951_v59 = vadd.f32 %v950_v21, %v877_v57  ;;  %v1009_v34 = vld [vmem:[#allocation2] sm:$0xff] (!%p1379_p11) }
 0x152   : > { %993 = vst [vmem:[#allocation2 + $0x20] sm:$0xff] %v977_v54  ;;  %v979_v60 = vadd.f32 %v949_v55, %v449_v52  ;;  %v1010_v37 = vld [vmem:[#allocation2 + $0x8] sm:$0xff] (!%p1379_p11)  ;;  %v1037_v51 = vadd.f32 (!%p1379_p11), %v1753_v42, %v1009_v34 }
 0x153   : > { %994 = vst [vmem:[#allocation2 + $0x28] sm:$0xff] %v978_v58  ;;  %v980_v61 = vadd.f32 %v951_v59, %v450_v56  ;;  %v1011_v39 = vld [vmem:[#allocation2 + $0x10] sm:$0xff] (!%p1379_p11) }
 0x154   : > { %995 = vst [vmem:[#allocation2 + $0x30] sm:$0xff] %v979_v60  ;;  %v1012_v40 = vld [vmem:[#allocation2 + $0x18] sm:$0xff] (!%p1379_p11)  ;;  %v1039_v53 = vadd.f32 (!%p1379_p11), %v1753_v42, %v1011_v39  ;;  %v1053_v59 = vmax.f32 (!%p1379_p11), %v1037_v51, 0.0 }
 0x155   : > { %996 = vst [vmem:[#allocation2 + $0x38] sm:$0xff] %v980_v61  ;;  %v881_v63 = vpop.f32.mrb[8].mxu1 }
 0x156   : > { %v955_v0 = vadd.f32 %v954_v22, %v881_v63  ;;  %v883_v2 = vpop.f32.mrb[9].mxu1  ;;  %v1055_v61 = vmax.f32 (!%p1379_p11), %v1039_v53, 0.0 }
 0x157   : > { %v957_v3 = vadd.f32 %v956_v23, %v883_v2  ;;  %v885_v5 = vpop.f32.mrb[10].mxu1 }
 0x158   : > { %v981_v6 = vadd.f32 %v955_v0, %v451_v62  ;;  %v959_v7 = vadd.f32 %v958_v24, %v885_v5  ;;  %v887_v9 = vpop.f32.mrb[11].mxu1  ;;  %v458_v24 = vld [vmem:[#allocation2 + $0x78] sm:$0xff]  ;;  %v1083_v5 = vmul.f32 (!%p1379_p11), %v1757_v47, %v1055_v61 }
 0x159   : > { %v982_v10 = vadd.f32 %v957_v3, %v452_v1  ;;  %v961_v11 = vadd.f32 %v960_v25, %v887_v9  ;;  %v1081_v3 = vmul.f32 (!%p1379_p11), %v1757_v47, %v1053_v59 }
 0x15a   : > { %997 = vst [vmem:[#allocation2 + $0x40] sm:$0xff] %v981_v6  ;;  %v983_v12 = vadd.f32 %v959_v7, %v453_v4  ;;  %v1014_v44 = vld [vmem:[#allocation2 + $0x28] sm:$0xff] (!%p1379_p11) }
 0x15b   : > { %998 = vst [vmem:[#allocation2 + $0x48] sm:$0xff] %v982_v10  ;;  %v984_v13 = vadd.f32 %v961_v11, %v454_v8 }
 0x15c   : > { %999 = vst [vmem:[#allocation2 + $0x50] sm:$0xff] %v983_v12  ;;  %v1016_v46 = vld [vmem:[#allocation2 + $0x38] sm:$0xff] (!%p1379_p11) }
 0x15d   : > { %1000 = vst [vmem:[#allocation2 + $0x58] sm:$0xff] %v984_v13  ;;  %v891_v15 = vpop.f32.mrb[12].mxu1 }
 0x15e   : > { %v965_v16 = vadd.f32 %v964_v38, %v891_v15  ;;  %v893_v18 = vpop.f32.mrb[13].mxu1  ;;  %v1033_v38 = vsub.s32 (!%p1379_p11), 1, %v1028_v31 }
 0x15f   : > { %v967_v19 = vadd.f32 %v966_v41, %v893_v18  ;;  %v895_v21 = vpop.f32.mrb[14].mxu1  ;;  %1008 = sbr.rel (%p1379_p11) target bundleno = 374 (0x176), region = 74  ;;  %v1013_v41 = vld [vmem:[#allocation2 + $0x20] sm:$0xff] (!%p1379_p11)  ;;  %v1111_v18 = vadd.f32 (!%p1379_p11), %v1759_v48, %v1083_v5 }
 0x160   : > { %v985_v22 = vadd.f32 %v965_v16, %v455_v14  ;;  %v969_v23 = vadd.f32 %v968_v43, %v895_v21  ;;  %v897_v26 = vpop.f32.mrb[15].mxu1  ;;  %v1755_v43 = vrot.slane (!%p1379_p11), %v1025_v32, %v1033_v38  ;;  %v1761_v49 = vrot.slane (!%p1379_p11), %v1069_v33, %v1033_v38 }
 0x161   : > { %v986_v27 = vadd.f32 %v967_v19, %v456_v17  ;;  %v971_v25 = vadd.f32 %v970_v45, %v897_v26  ;;  %v1015_v45 = vld [vmem:[#allocation2 + $0x30] sm:$0xff] (!%p1379_p11)  ;;  %v1763_v50 = vrot.slane (!%p1379_p11), %v1097_v36, %v1033_v38  ;;  %v1041_v55 = vadd.f32 (!%p1379_p11), %v1753_v42, %v1013_v41  ;;  %v1017_v7 = vld [vmem:[#allocation2 + $0x40] sm:$0xff] (!%p1379_p11)  ;;  %1127 = vst [vmem:[%s1881_s5 + $0x10] sm:$0xff] (!%p1379_p11), %v1111_v18 }
 0x162   : > { %1001 = vst [vmem:[#allocation2 + $0x60] sm:$0xff] %v985_v22  ;;  %v987_v28 = vadd.f32 %v969_v23, %v457_v20  ;;  %v1038_v52 = vadd.f32 (!%p1379_p11), %v1755_v43, %v1010_v37  ;;  %v1040_v54 = vadd.f32 (!%p1379_p11), %v1755_v43, %v1012_v40  ;;  %v1042_v56 = vadd.f32 (!%p1379_p11), %v1755_v43, %v1014_v44  ;;  %v1018_v8 = vld [vmem:[#allocation2 + $0x48] sm:$0xff] (!%p1379_p11) }
 0x163   : > { %1002 = vst [vmem:[#allocation2 + $0x68] sm:$0xff] %v986_v27  ;;  %v988_v29 = vadd.f32 %v971_v25, %v458_v24  ;;  %v1043_v57 = vadd.f32 (!%p1379_p11), %v1753_v42, %v1015_v45  ;;  %v1044_v58 = vadd.f32 (!%p1379_p11), %v1755_v43, %v1016_v46  ;;  %v1057_v63 = vmax.f32 (!%p1379_p11), %v1041_v55, 0.0  ;;  %v1019_v13 = vld [vmem:[#allocation2 + $0x50] sm:$0xff] (!%p1379_p11) }
 0x164   : > { %1003 = vst [vmem:[#allocation2 + $0x70] sm:$0xff] %v987_v28  ;;  %v1054_v60 = vmax.f32 (!%p1379_p11), %v1038_v52, 0.0  ;;  %v1056_v62 = vmax.f32 (!%p1379_p11), %v1040_v54, 0.0  ;;  %v1058_v0 = vmax.f32 (!%p1379_p11), %v1042_v56, 0.0  ;;  %v1020_v14 = vld [vmem:[#allocation2 + $0x58] sm:$0xff] (!%p1379_p11)  ;;  %v1109_v16 = vadd.f32 (!%p1379_p11), %v1759_v48, %v1081_v3 }
 0x165   : > { %1004 = vst [vmem:[#allocation2 + $0x78] sm:$0xff] %v988_v29  ;;  %v1059_v1 = vmax.f32 (!%p1379_p11), %v1043_v57, 0.0  ;;  %v1060_v2 = vmax.f32 (!%p1379_p11), %v1044_v58, 0.0  ;;  %v1085_v9 = vmul.f32 (!%p1379_p11), %v1757_v47, %v1057_v63  ;;  %v1045_v25 = vadd.f32 (!%p1379_p11), %v1753_v42, %v1017_v7 }
 0x166   : > { %v1082_v4 = vmul.f32 %v1761_v49, %v1054_v60  ;;  %v1084_v6 = vmul.f32 %v1761_v49, %v1056_v62  ;;  %v1086_v10 = vmul.f32 %v1761_v49, %v1058_v0  ;;  %1125 = vst [vmem:[%s1881_s5] sm:$0xff] %v1109_v16  ;;  %v1046_v28 = vadd.f32 %v1755_v43, %v1018_v8 }
 0x167   : > { %v1087_v11 = vmul.f32 %v1757_v47, %v1059_v1  ;;  %v1088_v12 = vmul.f32 %v1761_v49, %v1060_v2  ;;  %v1113_v23 = vadd.f32 %v1759_v48, %v1085_v9  ;;  %v1047_v29 = vadd.f32 %v1753_v42, %v1019_v13 }
 0x168   : > { %v1110_v17 = vadd.f32 %v1763_v50, %v1082_v4  ;;  %v1112_v19 = vadd.f32 %v1763_v50, %v1084_v6  ;;  %v1114_v24 = vadd.f32 %v1763_v50, %v1086_v10  ;;  %v1048_v30 = vadd.f32 %v1755_v43, %v1020_v14 }
 0x169   : > { %v1021_v15 = vld [vmem:[#allocation2 + $0x60] sm:$0xff]  ;;  %v1115_v26 = vadd.f32 %v1759_v48, %v1087_v11  ;;  %v1116_v27 = vadd.f32 %v1763_v50, %v1088_v12  ;;  %1129 = vst [vmem:[%s1881_s5 + $0x20] sm:$0xff] %v1113_v23  ;;  %v1061_v35 = vmax.f32 %v1045_v25, 0.0  ;;  %v1062_v36 = vmax.f32 %v1046_v28, 0.0 }
 0x16a   : > { %v1022_v20 = vld [vmem:[#allocation2 + $0x68] sm:$0xff]  ;;  %1126 = vst [vmem:[%s1881_s5 + $0x8] sm:$0xff] %v1110_v17  ;;  %1128 = vst [vmem:[%s1881_s5 + $0x18] sm:$0xff] %v1112_v19  ;;  %v1049_v31 = vadd.f32 %v1753_v42, %v1021_v15  ;;  %v1063_v37 = vmax.f32 %v1047_v29, 0.0  ;;  %v1064_v38 = vmax.f32 %v1048_v30, 0.0 }
 0x16b   : > { %v1023_v21 = vld [vmem:[#allocation2 + $0x70] sm:$0xff]  ;;  %1130 = vst [vmem:[%s1881_s5 + $0x28] sm:$0xff] %v1114_v24  ;;  %1131 = vst [vmem:[%s1881_s5 + $0x30] sm:$0xff] %v1115_v26  ;;  %v1050_v32 = vadd.f32 %v1755_v43, %v1022_v20  ;;  %v1089_v45 = vmul.f32 %v1757_v47, %v1061_v35  ;;  %v1090_v46 = vmul.f32 %v1761_v49, %v1062_v36 }
 0x16c   : > { %v1024_v22 = vld [vmem:[#allocation2 + $0x78] sm:$0xff]  ;;  %1132 = vst [vmem:[%s1881_s5 + $0x38] sm:$0xff] %v1116_v27  ;;  %v1051_v33 = vadd.f32 %v1753_v42, %v1023_v21  ;;  %v1065_v39 = vmax.f32 %v1049_v31, 0.0  ;;  %v1091_v51 = vmul.f32 %v1757_v47, %v1063_v37  ;;  %v1092_v52 = vmul.f32 %v1761_v49, %v1064_v38 }
 0x16d   : > { %v1052_v34 = vadd.f32 %v1755_v43, %v1024_v22  ;;  %v1066_v40 = vmax.f32 %v1050_v32, 0.0  ;;  %v1117_v55 = vadd.f32 %v1759_v48, %v1089_v45  ;;  %v1118_v56 = vadd.f32 %v1763_v50, %v1090_v46 }
 0x16e   : > { %v1067_v41 = vmax.f32 %v1051_v33, 0.0  ;;  %v1093_v42 = vmul.f32 %v1757_v47, %v1065_v39  ;;  %v1119_v57 = vadd.f32 %v1759_v48, %v1091_v51  ;;  %v1120_v58 = vadd.f32 %v1763_v50, %v1092_v52 }
 0x16f   : > { %v1068_v44 = vmax.f32 %v1052_v34, 0.0  ;;  %v1094_v43 = vmul.f32 %v1761_v49, %v1066_v40  ;;  %1133 = vst [vmem:[%s1881_s5 + $0x40] sm:$0xff] %v1117_v55  ;;  %1134 = vst [vmem:[%s1881_s5 + $0x48] sm:$0xff] %v1118_v56 }
 0x170   : > { %v1095_v53 = vmul.f32 %v1757_v47, %v1067_v41  ;;  %v1121_v59 = vadd.f32 %v1759_v48, %v1093_v42  ;;  %1135 = vst [vmem:[%s1881_s5 + $0x50] sm:$0xff] %v1119_v57  ;;  %1136 = vst [vmem:[%s1881_s5 + $0x58] sm:$0xff] %v1120_v58 }
 0x171   : > { %v1096_v54 = vmul.f32 %v1761_v49, %v1068_v44  ;;  %v1122_v60 = vadd.f32 %v1763_v50, %v1094_v43 }
 0x172   : > { %v1123_v61 = vadd.f32 %v1759_v48, %v1095_v53  ;;  %1137 = vst [vmem:[%s1881_s5 + $0x60] sm:$0xff] %v1121_v59 }
 0x173   : > { %v1124_v62 = vadd.f32 %v1763_v50, %v1096_v54  ;;  %1138 = vst [vmem:[%s1881_s5 + $0x68] sm:$0xff] %v1122_v60 }
 0x174   : > { %1139 = vst [vmem:[%s1881_s5 + $0x70] sm:$0xff] %v1123_v61 }
 0x175   : > { %1140 = vst [vmem:[%s1881_s5 + $0x78] sm:$0xff] %v1124_v62 }
 0x176 PF: > { %s15_s22 = sadd.s32 1, %s1572_s22   ;;  %s1882_s18 = smov %s1560_s19 }
 0x177   : > { %p12_p12 = scmp.ge.s32.totalorder %s15_s22, 5   ;;  %s1883_s19 = smov %s1641_s26 }
 0x178   : > { %s1884_s20 = smov %s1568_s21  ;;  %s1885_s21 = smov %s1887_s23 }
 0x179   :  { %14 = sbr.rel (!%p12_p12) target bundleno = 3 (0x3), region = 127 }

// kernel: _lambda_.7
= control target key start
LH: loop header
LB: loop body
LE: loop exit
PB: predicated region body
PF: predicated region fallthrough
CT: control target
= control target key end

     0   :  { %v17_v0 = vlaneseq  ;;  %v133_v1 = vmov 1983009808   ;;  %vm24_vm0 = vcmask 1041408   ;;  %v134_v18 = vmov 269488144   ;;  %s169_s0 = inlined_call_operand.vmem [shape: f32[2,256], index: 0, kind: input, shape index: {}]   ;;  %s170_s1 = inlined_call_operand.vmem [shape: f32[2,256], index: 1, kind: input, shape index: {}]   ;;  %s171_s2 = inlined_call_operand.vmem [shape: f32[2,128], index: 2, kind: output, shape index: {}]  }
   0x1   :  { %v15_v2 = vunpack.c.l.s4 %v133_v1  ;;  %v11_v5 = vld [vmem:[%s169_s0] sm:$0xf]  ;;  %v51_v19 = vunpack.c.l.s4 %v134_v18 }
   0x2   :  { %v18_v3 = vshrl.u32 %v17_v0, 7  ;;  %v12_v6 = vld [vmem:[%s170_s1] sm:$0xf] }
   0x3   :  { %v16_v4 = vunpack.c.0.s8 %v15_v2  ;;  %v52_v20 = vunpack.c.0.s8 %v51_v19 }
   0x5   :  { %v19_v7 = vsub.s32 %v16_v4, %v18_v3  ;;  %v55_v21 = vsub.s32 %v52_v20, %v18_v3 }
   0x7   :  { %v20_v8 = vrot.slane %v11_v5, %v19_v7  ;;  %v39_v9 = vrot.slane %v12_v6, %v19_v7 }
   0x9   :  { %v21_v10 = vcombine.high %v20_v8, %v20_v8  ;;  %v25_v11 = vsel %vm24_vm0, %v20_v8, 0.0  ;;  %v40_v12 = vcombine.high %v39_v9, %v39_v9  ;;  %v43_v14 = vsel %vm24_vm0, %v39_v9, 0.0 }
   0xb   :  { %v26_v13 = vsel %vm24_vm0, %v21_v10, 0.0  ;;  %v44_v15 = vsel %vm24_vm0, %v40_v12, 0.0 }
   0xc   :  { %v27_v16 = vadd.f32 %v26_v13, %v25_v11  ;;  %v45_v17 = vadd.f32 %v44_v15, %v43_v14 }
   0xe   :  { %28 = vadd.xlane.f32.xlu0 %v27_v16 }
  0x12   :  { %46 = vadd.xlane.f32.xlu0 %v45_v17 }
  0x9b   :  { %v29_v22 = vpop.xlane.xlu0 %28 }
  0x9c   :  { %v31_v23 = vmul.f32 0.00390625, %v29_v22 }
  0x9e   :  { %v56_v24 = vrot.slane %v31_v23, %v55_v21 }
  0x9f   :  { %v47_v25 = vpop.xlane.xlu0 %46 }
  0xa0   :  { %v58_v26 = vsub.f32 %v11_v5, %v56_v24  ;;  %v48_v27 = vmul.f32 0.00390625, %v47_v25 }
  0xa2   :  { %v66_v28 = vrot.slane %v48_v27, %v55_v21  ;;  %v86_v29 = vmul.f32 %v58_v26, %v58_v26 }
  0xa4   :  { %v68_v30 = vsub.f32 %v12_v6, %v66_v28  ;;  %v94_v31 = vrot.slane %v86_v29, %v19_v7 }
  0xa6   :  { %v95_v32 = vcombine.high %v94_v31, %v94_v31  ;;  %v103_v33 = vmul.f32 %v68_v30, %v68_v30  ;;  %v69_v34 = vmul.f32 %v68_v30, %v58_v26  ;;  %v98_v35 = vsel %vm24_vm0, %v94_v31, 0.0 }
  0xa8   :  { %v99_v36 = vsel %vm24_vm0, %v95_v32, 0.0  ;;  %v111_v37 = vrot.slane %v103_v33, %v19_v7  ;;  %v77_v38 = vrot.slane %v69_v34, %v19_v7 }
  0xa9   :  { %v100_v39 = vadd.f32 %v99_v36, %v98_v35 }
  0xaa   :  { %v112_v40 = vcombine.high %v111_v37, %v111_v37  ;;  %v78_v41 = vcombine.high %v77_v38, %v77_v38  ;;  %v115_v42 = vsel %vm24_vm0, %v111_v37, 0.0  ;;  %v81_v44 = vsel %vm24_vm0, %v77_v38, 0.0 }
  0xab   :  { %101 = vadd.xlane.f32.xlu1 %v100_v39 }
  0xac   :  { %v116_v43 = vsel %vm24_vm0, %v112_v40, 0.0  ;;  %v82_v45 = vsel %vm24_vm0, %v78_v41, 0.0 }
  0xad   :  { %v117_v46 = vadd.f32 %v116_v43, %v115_v42  ;;  %v83_v47 = vadd.f32 %v82_v45, %v81_v44 }
  0xaf   :  { %118 = vadd.xlane.f32.xlu1 %v117_v46  ;;  %84 = vadd.xlane.f32.xlu0 %v83_v47 }
 0x138   :  { %v102_v48 = vpop.xlane.xlu1 %101 }
 0x13c   :  { %v119_v49 = vpop.xlane.xlu1 %118  ;;  %v85_v53 = vpop.xlane.xlu0 %84 }
 0x13d   :  { %v120_v50 = vmul.f32 %v119_v49, %v102_v48 }
 0x13f   :  { %v121_v51 = vadd.f32 1e-12, %v120_v50 }
 0x141   :  { %131 = vrsqrt.f32 %v121_v51 }
 0x14b   :  { %v132_v52 = vpop.eup %131 }
 0x14c   :  { %v123_v54 = vmul.f32 %v132_v52, %v85_v53 }
 0x14e   :  { %124 = vst [vmem:[%s171_s2] sm:$0x3] %v123_v54 }

// kernel: _lambda_.6
= control target key start
LH: loop header
LB: loop body
LE: loop exit
PB: predicated region body
PF: predicated region fallthrough
CT: control target
= control target key end

     0   :  { %s1258_s12 = smov 0   ;;  %s1260_s13 = smov 0   ;;  %s1412_s0 = inlined_call_operand.vmem [shape: bf16[16,4096], index: 0, kind: input, shape index: {}]   ;;  %s1413_s1 = inlined_call_operand.vmem [shape: bf16[4096,256], index: 1, kind: input, shape index: {}]   ;;  %s1414_s2 = inlined_call_operand.vmem [shape: f32[1,256], index: 2, kind: input, shape index: {}]   ;;  %s1415_s3 = inlined_call_operand.vmem [shape: f32[16,256], index: 3, kind: output, shape index: {}]  }
   0x1   :  { %s1262_s14 = smov 0   ;;  %s1264_s15 = smov 0  }
   0x2   :  { %s1266_s16 = smov 0  }
   0x3 LB: > { %s25_s17 = sadd.s32 1, %s1231_s15  ;;  %p48_p1 = scmp.ne.s32.totalorder %s1223_s13, %s1219_s12  ;;  %s1235_s16 = sphi %s1266_s16, %s13_s16   ;;  %s1231_s15 = sphi %s1264_s15, %s1419_s15   ;;  %s1227_s14 = sphi %s1262_s14, %s1418_s14   ;;  %s1223_s13 = sphi %s1260_s13, %s1417_s13   ;;  %s1219_s12 = sphi %s1258_s12, %s1416_s12  }
   0x4   : > { %p26_p0 = scmp.ge.s32.totalorder %s25_s17, 8  ;;  %p49_p2 = scmp.eq.s32.totalorder %s1235_s16, 0 }
   0x5   : > { %s41_s19 = sadd.s32 1, %s1223_s13  ;;  %p965_p5 = scmp.ge.s32.totalorder %s1235_s16, 8 }
   0x6   : > { %s1421_s17 = smov (%p26_p0, %s25_s17), 0  ;;  %p50_p3 = por %p49_p2, %p48_p1 }
   0x7   : > { %s37_s18 = ssub.s32 %s1231_s15, %s1421_s17  ;;  %164 = sbr.rel (%p965_p5) target bundleno = 21 (0x15), region = 20 }
   0x8   : > { %p39_p4 = scmp.eq.s32.totalorder %s37_s18, 0 }
   0xa   : > { %s1293_s20 = scalar_select %p39_p4, %s1223_s13, %s41_s19  }
   0xe   : > { %167 = sbr.rel (!%p50_p3) target bundleno = 21 (0x15), region = 24  ;;  %s169_s21 = sand.u32 (%p50_p3), 1, %s1223_s13  }
   0xf   : > { %s1048_s22 = sshll.u32 (%p50_p3), %s1231_s15, 4  ;;  %s966_s23 = sshll.u32 (%p50_p3), %s169_s21, 5 }
  0x10   : > { %s177_s26 = scalar_lea.vmem (%p50_p3), %s1412_s0, %s1048_s22  ;;  %s171_s27 = scalar_lea.vmem (%p50_p3), [#allocation3], %s966_s23 }
  0x11   : > { %v190_v0 = vld [vmem:[%s177_s26] sm:$0xff] (%p50_p3)  ;;  %v192_v1 = vld [vmem:[%s177_s26 + $0x8] sm:$0xff] (%p50_p3) }
  0x12   : > { %v194_v2 = vld [vmem:[%s177_s26 + $0x80] sm:$0xff] (%p50_p3)  ;;  %191 = vst [vmem:[%s171_s27] sm:$0xff] (%p50_p3), %v190_v0  ;;  %193 = vst [vmem:[%s171_s27 + $0x8] sm:$0xff] (%p50_p3), %v192_v1  ;;  %v196_v3 = vld [vmem:[%s177_s26 + $0x88] sm:$0xff] (%p50_p3) }
  0x13   : > { %195 = vst [vmem:[%s171_s27 + $0x10] sm:$0xff] (%p50_p3), %v194_v2  ;;  %197 = vst [vmem:[%s171_s27 + $0x18] sm:$0xff] (%p50_p3), %v196_v3 }
  0x15 PF: > { %p969_p6 = scmp.ge.s32.totalorder %s1235_s16, 1  ;;  %p217_p7 = scmp.lt.s32.totalorder %s1235_s16, 9 }
  0x17   : > { %p218_p8 = pnand %p969_p6, %p217_p7 }
  0x18   : > { %s224_s28 = sand.u32 (!%p218_p8), 1, %s1219_s12   ;;  %s971_s29 = sshll.u32 (!%p218_p8), %s1227_s14, 6 }
  0x19   : > { %221 = sbr.rel (%p218_p8) target bundleno = 335 (0x14f), region = 51  ;;  %s970_s30 = sshll.u32 (!%p218_p8), %s224_s28, 5 }
  0x1a   : > { %p270_p9 = scmp.lt.s32.totalorder (!%p218_p8), %s971_s29, 511  ;;  %s1310_s8 = scalar_lea.vmem (!%p218_p8), [#allocation3], %s970_s30 }
  0x1b   : > { %p974_p10 = scmp.ne.s32.totalorder (!%p218_p8), %s1227_s14, 0 }
  0x20   : > { %s1423_s29 = smov (!%p270_p9, %s971_s29), 511  ;;  %300 = sbr.rel (%p974_p10) target bundleno = 39 (0x27), region = 59 }
  0x21   : > { %s1049_s4 = sshll.u32 %s1423_s29, 3  ;;  %v1237_v4 = vmov (!%p974_p10), 0.0  }
  0x22   : > { %s1308_s7 = scalar_lea.vmem %s1413_s1, %s1049_s4  ;;  %301 = vst [vmem:[#allocation2] sm:$0xff] (!%p974_p10), %v1237_v4  ;;  %302 = vst [vmem:[#allocation2 + $0x8] sm:$0xff] (!%p974_p10), %v1237_v4 }
  0x23   : > { %303 = vst [vmem:[#allocation2 + $0x10] sm:$0xff] (!%p974_p10), %v1237_v4  ;;  %304 = vst [vmem:[#allocation2 + $0x18] sm:$0xff] (!%p974_p10), %v1237_v4 }
  0x27 PF: > { %v1095_v5 = vld [vmem:[%s1308_s7 + $0x4] ss:$8 sps:$4 sm:$0xff]   ;;  %v1099_v7 = vld [vmem:[%s1308_s7] ss:$8 sps:$4 sm:$0xff]   ;;  %v1101_v9 = vld [vmem:[%s1308_s7 + $0x14] ss:$8 sps:$4 sm:$0xff]  }
  0x28   : > { %v1097_v6 = vld [vmem:[%s1308_s7 + $0x104] ss:$8 sps:$4 sm:$0xff]   ;;  %717 = vmatprep.subr.bf16.mxu1 %v1095_v5  ;;  %v1100_v8 = vld [vmem:[%s1308_s7 + $0x100] ss:$8 sps:$4 sm:$0xff]   ;;  %v1103_v10 = vld [vmem:[%s1308_s7 + $0x114] ss:$8 sps:$4 sm:$0xff]  }
  0x29   : > { %760 = vmatprep.subr.bf16.mxu0 %v1097_v6  ;;  %718 = vmatpush1.bf16.msra.mxu1 %v1099_v7  ;;  %v1105_v11 = vld [vmem:[%s1308_s7 + $0x10] ss:$8 sps:$4 sm:$0xff]   ;;  %v1107_v13 = vld [vmem:[%s1308_s7 + $0x24] ss:$8 sps:$4 sm:$0xff]   ;;  %v1111_v15 = vld [vmem:[%s1308_s7 + $0x20] ss:$8 sps:$4 sm:$0xff]  }
  0x2a   : > { %761 = vmatpush1.bf16.msra.mxu0 %v1100_v8  ;;  %719 = vmatprep.subr.bf16.mxu1 %v1101_v9  ;;  %v1106_v12 = vld [vmem:[%s1308_s7 + $0x110] ss:$8 sps:$4 sm:$0xff]   ;;  %v1109_v14 = vld [vmem:[%s1308_s7 + $0x124] ss:$8 sps:$4 sm:$0xff]   ;;  %v1112_v16 = vld [vmem:[%s1308_s7 + $0x120] ss:$8 sps:$4 sm:$0xff]  }
  0x2b   : > { %762 = vmatprep.subr.bf16.mxu0 %v1103_v10  ;;  %v1113_v17 = vld [vmem:[%s1308_s7 + $0x34] ss:$8 sps:$4 sm:$0xff]   ;;  %v1117_v19 = vld [vmem:[%s1308_s7 + $0x30] ss:$8 sps:$4 sm:$0xff]   ;;  %v1119_v21 = vld [vmem:[%s1308_s7 + $0x44] ss:$8 sps:$4 sm:$0xff]  }
  0x2c   : > { %v1115_v18 = vld [vmem:[%s1308_s7 + $0x134] ss:$8 sps:$4 sm:$0xff]   ;;  %v1118_v20 = vld [vmem:[%s1308_s7 + $0x130] ss:$8 sps:$4 sm:$0xff]   ;;  %v1121_v22 = vld [vmem:[%s1308_s7 + $0x144] ss:$8 sps:$4 sm:$0xff]  }
  0x2d   : > { %720 = vmatpush1.bf16.msra.mxu1 %v1105_v11  ;;  %v1123_v23 = vld [vmem:[%s1308_s7 + $0x40] ss:$8 sps:$4 sm:$0xff]   ;;  %v1125_v25 = vld [vmem:[%s1308_s7 + $0x54] ss:$8 sps:$4 sm:$0xff]   ;;  %v1129_v27 = vld [vmem:[%s1308_s7 + $0x50] ss:$8 sps:$4 sm:$0xff]  }
  0x2e   : > { %763 = vmatpush1.bf16.msra.mxu0 %v1106_v12  ;;  %721 = vmatprep.subr.bf16.mxu1 %v1107_v13  ;;  %v1124_v24 = vld [vmem:[%s1308_s7 + $0x140] ss:$8 sps:$4 sm:$0xff]   ;;  %v1127_v26 = vld [vmem:[%s1308_s7 + $0x154] ss:$8 sps:$4 sm:$0xff]   ;;  %v1130_v28 = vld [vmem:[%s1308_s7 + $0x150] ss:$8 sps:$4 sm:$0xff]  }
  0x2f   : > { %764 = vmatprep.subr.bf16.mxu0 %v1109_v14  ;;  %v1131_v29 = vld [vmem:[%s1308_s7 + $0x64] ss:$8 sps:$4 sm:$0xff]   ;;  %v1135_v31 = vld [vmem:[%s1308_s7 + $0x60] ss:$8 sps:$4 sm:$0xff]   ;;  %v1137_v33 = vld [vmem:[%s1308_s7 + $0x74] ss:$8 sps:$4 sm:$0xff]  }
  0x30   : > { %v1133_v30 = vld [vmem:[%s1308_s7 + $0x164] ss:$8 sps:$4 sm:$0xff]   ;;  %v1136_v32 = vld [vmem:[%s1308_s7 + $0x160] ss:$8 sps:$4 sm:$0xff]   ;;  %v1139_v34 = vld [vmem:[%s1308_s7 + $0x174] ss:$8 sps:$4 sm:$0xff]  }
  0x31   : > { %722 = vmatpush1.bf16.msra.mxu1 %v1111_v15  ;;  %v1141_v35 = vld [vmem:[%s1308_s7 + $0x70] ss:$8 sps:$4 sm:$0xff]   ;;  %v1143_v37 = vld [vmem:[%s1308_s7 + $0x84] ss:$8 sps:$4 sm:$0xff]   ;;  %v1147_v39 = vld [vmem:[%s1308_s7 + $0x80] ss:$8 sps:$4 sm:$0xff]  }
  0x32   : > { %765 = vmatpush1.bf16.msra.mxu0 %v1112_v16  ;;  %723 = vmatprep.subr.bf16.mxu1 %v1113_v17  ;;  %v1142_v36 = vld [vmem:[%s1308_s7 + $0x170] ss:$8 sps:$4 sm:$0xff]   ;;  %v1145_v38 = vld [vmem:[%s1308_s7 + $0x184] ss:$8 sps:$4 sm:$0xff]   ;;  %v1148_v40 = vld [vmem:[%s1308_s7 + $0x180] ss:$8 sps:$4 sm:$0xff]  }
  0x33   : > { %766 = vmatprep.subr.bf16.mxu0 %v1115_v18  ;;  %v1149_v41 = vld [vmem:[%s1308_s7 + $0x94] ss:$8 sps:$4 sm:$0xff]   ;;  %v1153_v43 = vld [vmem:[%s1308_s7 + $0x90] ss:$8 sps:$4 sm:$0xff]   ;;  %v1155_v45 = vld [vmem:[%s1308_s7 + $0xa4] ss:$8 sps:$4 sm:$0xff]  }
  0x34   : > { %v1151_v42 = vld [vmem:[%s1308_s7 + $0x194] ss:$8 sps:$4 sm:$0xff]   ;;  %v1154_v44 = vld [vmem:[%s1308_s7 + $0x190] ss:$8 sps:$4 sm:$0xff]   ;;  %v1157_v46 = vld [vmem:[%s1308_s7 + $0x1a4] ss:$8 sps:$4 sm:$0xff]  }
  0x35   : > { %724 = vmatpush1.bf16.msra.mxu1 %v1117_v19  ;;  %v1159_v47 = vld [vmem:[%s1308_s7 + $0xa0] ss:$8 sps:$4 sm:$0xff]   ;;  %v1161_v49 = vld [vmem:[%s1308_s7 + $0xb4] ss:$8 sps:$4 sm:$0xff]   ;;  %v1165_v51 = vld [vmem:[%s1308_s7 + $0xb0] ss:$8 sps:$4 sm:$0xff]  }
  0x36   : > { %767 = vmatpush1.bf16.msra.mxu0 %v1118_v20  ;;  %725 = vmatprep.subr.bf16.mxu1 %v1119_v21  ;;  %v1160_v48 = vld [vmem:[%s1308_s7 + $0x1a0] ss:$8 sps:$4 sm:$0xff]   ;;  %v1163_v50 = vld [vmem:[%s1308_s7 + $0x1b4] ss:$8 sps:$4 sm:$0xff]   ;;  %v1166_v53 = vld [vmem:[%s1308_s7 + $0x1b0] ss:$8 sps:$4 sm:$0xff]  }
  0x37   : > { %768 = vmatprep.subr.bf16.mxu0 %v1121_v22  ;;  %v1193_v52 = vld [vmem:[%s1310_s8 + $0x4] ss:$16 sps:$4 sm:$0xff]   ;;  %v1196_v56 = vld [vmem:[%s1310_s8 + $0xc] ss:$16 sps:$4 sm:$0xff]   ;;  %v1171_v57 = vld [vmem:[%s1308_s7 + $0xc0] ss:$8 sps:$4 sm:$0xff]  }
  0x38   : > { %v1167_v54 = vld [vmem:[%s1308_s7 + $0xc4] ss:$8 sps:$4 sm:$0xff]   ;;  %749 = vmatprep.mubr.bf16.mxu1 %v1193_v52  ;;  %792 = vmatprep.mubr.bf16.mxu0 %v1196_v56  ;;  %v1172_v58 = vld [vmem:[%s1308_s7 + $0x1c0] ss:$8 sps:$4 sm:$0xff]   ;;  %v1173_v59 = vld [vmem:[%s1308_s7 + $0xd4] ss:$8 sps:$4 sm:$0xff]  }
  0x39   : > { %726 = vmatpush1.bf16.msra.mxu1 %v1123_v23  ;;  %v1169_v55 = vld [vmem:[%s1308_s7 + $0x1c4] ss:$8 sps:$4 sm:$0xff]   ;;  %v1175_v60 = vld [vmem:[%s1308_s7 + $0x1d4] ss:$8 sps:$4 sm:$0xff]   ;;  %v1177_v61 = vld [vmem:[%s1308_s7 + $0xd0] ss:$8 sps:$4 sm:$0xff]  }
  0x3a   : > { %769 = vmatpush1.bf16.msra.mxu0 %v1124_v24  ;;  %727 = vmatprep.subr.bf16.mxu1 %v1125_v25  ;;  %v1178_v62 = vld [vmem:[%s1308_s7 + $0x1d0] ss:$8 sps:$4 sm:$0xff]   ;;  %v1179_v63 = vld [vmem:[%s1308_s7 + $0xe4] ss:$8 sps:$4 sm:$0xff]   ;;  %v1183_v1 = vld [vmem:[%s1308_s7 + $0xe0] ss:$8 sps:$4 sm:$0xff]  }
  0x3b   : > { %770 = vmatprep.subr.bf16.mxu0 %v1127_v26  ;;  %v1181_v0 = vld [vmem:[%s1308_s7 + $0x1e4] ss:$8 sps:$4 sm:$0xff]   ;;  %v1184_v2 = vld [vmem:[%s1308_s7 + $0x1e0] ss:$8 sps:$4 sm:$0xff]   ;;  %v1185_v3 = vld [vmem:[%s1308_s7 + $0xf4] ss:$8 sps:$4 sm:$0xff]  }
  0x3c   : > { %v1187_v4 = vld [vmem:[%s1308_s7 + $0x1f4] ss:$8 sps:$4 sm:$0xff]   ;;  %v1189_v5 = vld [vmem:[%s1308_s7 + $0xf0] ss:$8 sps:$4 sm:$0xff]   ;;  %v305_v10 = vld [vmem:[#allocation2] sm:$0xff]  ;;  %p1043_p11 = scmp.ne.s32.totalorder %s1227_s14, 7 }
  0x3d   : > { %728 = vmatpush1.bf16.msra.mxu1 %v1129_v27  ;;  %v1190_v6 = vld [vmem:[%s1308_s7 + $0x1f0] ss:$8 sps:$4 sm:$0xff]   ;;  %v306_v14 = vld [vmem:[#allocation2 + $0x8] sm:$0xff] }
  0x3e   : > { %771 = vmatpush1.bf16.msra.mxu0 %v1130_v28  ;;  %729 = vmatprep.subr.bf16.mxu1 %v1131_v29  ;;  %v1191_v7 = vld [vmem:[%s1310_s8] ss:$16 sps:$4 sm:$0xff]   ;;  %v1194_v8 = vld [vmem:[%s1310_s8 + $0x8] ss:$16 sps:$4 sm:$0xff]   ;;  %v821_v29 = vlaneseq (!%p1043_p11) }
  0x3f   : > { %772 = vmatprep.subr.bf16.mxu0 %v1133_v30  ;;  %v307_v18 = vld [vmem:[#allocation2 + $0x10] sm:$0xff]  ;;  %v308_v23 = vld [vmem:[#allocation2 + $0x18] sm:$0xff] }
  0x40   : > { %v822_v30 = vshrl.u32 (!%p1043_p11), %v821_v29, 7 }
  0x41   : > { %730 = vmatpush1.bf16.msra.mxu1 %v1135_v31  ;;  %v819_v31 = vld [vmem:[%s1414_s2] sm:$0x3] (!%p1043_p11) }
  0x42   : > { %773 = vmatpush1.bf16.msra.mxu0 %v1136_v32  ;;  %731 = vmatprep.subr.bf16.mxu1 %v1137_v33  ;;  %v823_v33 = vsub.s32 (!%p1043_p11), 0, %v822_v30 }
  0x43   : > { %774 = vmatprep.subr.bf16.mxu0 %v1139_v34  ;;  %v827_v34 = vsub.s32 (!%p1043_p11), 1, %v822_v30 }
  0x45   : > { %732 = vmatpush1.bf16.msra.mxu1 %v1141_v35 }
  0x46   : > { %775 = vmatpush1.bf16.msra.mxu0 %v1142_v36  ;;  %733 = vmatprep.subr.bf16.mxu1 %v1143_v37 }
  0x47   : > { %776 = vmatprep.subr.bf16.mxu0 %v1145_v38  ;;  %v824_v38 = vrot.slane (!%p1043_p11), %v819_v31, %v823_v33 }
  0x49   : > { %734 = vmatpush1.bf16.msra.mxu1 %v1147_v39  ;;  %v828_v39 = vrot.slane (!%p1043_p11), %v819_v31, %v827_v34 }
  0x4a   : > { %777 = vmatpush1.bf16.msra.mxu0 %v1148_v40  ;;  %735 = vmatprep.subr.bf16.mxu1 %v1149_v41 }
  0x4b   : > { %778 = vmatprep.subr.bf16.mxu0 %v1151_v42 }
  0x4d   : > { %736 = vmatpush1.bf16.msra.mxu1 %v1153_v43 }
  0x4e   : > { %779 = vmatpush1.bf16.msra.mxu0 %v1154_v44  ;;  %737 = vmatprep.subr.bf16.mxu1 %v1155_v45 }
  0x4f   : > { %780 = vmatprep.subr.bf16.mxu0 %v1157_v46 }
  0x51   : > { %738 = vmatpush1.bf16.msra.mxu1 %v1159_v47 }
  0x52   : > { %781 = vmatpush1.bf16.msra.mxu0 %v1160_v48  ;;  %739 = vmatprep.subr.bf16.mxu1 %v1161_v49 }
  0x53   : > { %782 = vmatprep.subr.bf16.mxu0 %v1163_v50 }
  0x55   : > { %740 = vmatpush1.bf16.msra.mxu1 %v1165_v51 }
  0x56   : > { %783 = vmatpush1.bf16.msra.mxu0 %v1166_v53  ;;  %741 = vmatprep.subr.bf16.mxu1 %v1167_v54 }
  0x57   : > { %784 = vmatprep.subr.bf16.mxu0 %v1169_v55 }
  0x59   : > { %742 = vmatpush1.bf16.msra.mxu1 %v1171_v57 }
  0x5a   : > { %785 = vmatpush1.bf16.msra.mxu0 %v1172_v58  ;;  %743 = vmatprep.subr.bf16.mxu1 %v1173_v59 }
  0x5b   : > { %786 = vmatprep.subr.bf16.mxu0 %v1175_v60 }
  0x5d   : > { %744 = vmatpush1.bf16.msra.mxu1 %v1177_v61 }
  0x5e   : > { %787 = vmatpush1.bf16.msra.mxu0 %v1178_v62  ;;  %745 = vmatprep.subr.bf16.mxu1 %v1179_v63 }
  0x5f   : > { %788 = vmatprep.subr.bf16.mxu0 %v1181_v0 }
  0x61   : > { %746 = vmatpush1.bf16.msra.mxu1 %v1183_v1 }
  0x62   : > { %789 = vmatpush1.bf16.msra.mxu0 %v1184_v2  ;;  %747 = vmatprep.subr.bf16.mxu1 %v1185_v3 }
  0x63   : > { %790 = vmatprep.subr.bf16.mxu0 %v1187_v4 }
  0x65   : > { %748 = vmatpush1.bf16.msra.mxu1 %v1189_v5 }
  0x66   : > { %791 = vmatpush1.bf16.msra.mxu0 %v1190_v6 }
  0x68   : > { %750 = vmatmul.mubr.bf16.vlgmr.msra.gmra.mrb[0].mxu1 %v1191_v7 }
  0x69   : > { %793 = vmatmul.mubr.bf16.vlgmr.msra.gmra.mrb[0].mxu0 %v1194_v8 }
 0x13b   : > { %v751_v9 = vpop.f32.mrb[0].mxu1 }
 0x13c   : > { %v794_v11 = vpop.f32.mrb[0].mxu0  ;;  %v753_v13 = vpop.f32.mrb[1].mxu1 }
 0x13d   : > { %v795_v12 = vadd.f32 %v794_v11, %v751_v9  ;;  %v796_v15 = vpop.f32.mrb[1].mxu0  ;;  %v755_v17 = vpop.f32.mrb[2].mxu1 }
 0x13e   : > { %v797_v16 = vadd.f32 %v796_v15, %v753_v13  ;;  %v798_v19 = vpop.f32.mrb[2].mxu0  ;;  %v757_v22 = vpop.f32.mrb[3].mxu1  ;;  %814 = sbr.rel (%p1043_p11) target bundleno = 335 (0x14f), region = 63 }
 0x13f   : > { %v803_v20 = vadd.f32 %v795_v12, %v305_v10  ;;  %v799_v21 = vadd.f32 %v798_v19, %v755_v17  ;;  %v800_v24 = vpop.f32.mrb[3].mxu0 }
 0x140   : > { %v804_v25 = vadd.f32 %v797_v16, %v306_v14  ;;  %v801_v26 = vadd.f32 %v800_v24, %v757_v22 }
 0x141   : > { %807 = vst [vmem:[#allocation2] sm:$0xff] %v803_v20  ;;  %v805_v27 = vadd.f32 %v799_v21, %v307_v18 }
 0x142   : > { %808 = vst [vmem:[#allocation2 + $0x8] sm:$0xff] %v804_v25  ;;  %v806_v28 = vadd.f32 %v801_v26, %v308_v23 }
 0x143   : > { %809 = vst [vmem:[#allocation2 + $0x10] sm:$0xff] %v805_v27 }
 0x144   : > { %810 = vst [vmem:[#allocation2 + $0x18] sm:$0xff] %v806_v28 }
 0x148   : > { %v815_v32 = vld [vmem:[#allocation2] sm:$0xff] }
 0x149   : > { %v816_v35 = vld [vmem:[#allocation2 + $0x8] sm:$0xff]  ;;  %v831_v40 = vadd.f32 %v824_v38, %v815_v32 }
 0x14a   : > { %v817_v36 = vld [vmem:[#allocation2 + $0x10] sm:$0xff]  ;;  %v832_v41 = vadd.f32 %v828_v39, %v816_v35 }
 0x14b   : > { %v818_v37 = vld [vmem:[#allocation2 + $0x18] sm:$0xff]  ;;  %v833_v42 = vadd.f32 %v824_v38, %v817_v36  ;;  %835 = vst [vmem:[%s1415_s3] sm:$0xff] %v831_v40 }
 0x14c   : > { %v834_v43 = vadd.f32 %v828_v39, %v818_v37  ;;  %836 = vst [vmem:[%s1415_s3 + $0x8] sm:$0xff] %v832_v41 }
 0x14d   : > { %837 = vst [vmem:[%s1415_s3 + $0x10] sm:$0xff] %v833_v42 }
 0x14e   : > { %838 = vst [vmem:[%s1415_s3 + $0x18] sm:$0xff] %v834_v43 }
 0x14f PF: > { %s13_s16 = sadd.s32 1, %s1235_s16   ;;  %s1416_s12 = smov %s1223_s13 }
 0x150   : > { %p10_p12 = scmp.ge.s32.totalorder %s13_s16, 10   ;;  %s1417_s13 = smov %s1293_s20 }
 0x151   : > { %s1418_s14 = smov %s1231_s15  ;;  %s1419_s15 = smov %s1421_s17 }
 0x152   :  { %12 = sbr.rel (!%p10_p12) target bundleno = 3 (0x3), region = 104 }

</bundles_post_ra>
